<compile_context>
chip_gen: v6e
topology: v6e:2x2x1
jax: 0.10.0
libtpu: 0.0.40
codegen_flags: <defaults>
</compile_context>

<pallas_src>
import functools

import numpy as np
import jax
import jax.numpy as jnp
from jax import lax
from jax.experimental import pallas as pl
from jax.experimental.pallas import tpu as pltpu

_EPS = 1e-5          # torch BatchNorm1d default eps
_SP_THRESH = 20.0    # torch.nn.Softplus default threshold


def _softplus(x):
    # torch Softplus: x for x > threshold, else log(1 + exp(x)).
    return jnp.where(x > _SP_THRESH, x, jnp.log(1.0 + jnp.exp(jnp.minimum(x, _SP_THRESH))))


def _convlayer_kernel(atom_ref, nbr_ref, wsn_ref, wb_ref, vec_ref, o_ref,
                      *, GB, N, M, A, B):
    """One grid step == GB independent graphs (GB ConvLayer.forward invocations).

    Row layout inside the block: graph-major, then neighbor-slot-major, then atom
    (row = g*NM + m*N + n), so the neighbor-sum pooling is M sublane-aligned slices
    and per-graph BN is an axis-1 reduction.  Feature channels live on lanes.

    nbr_ref lane layout (built by the wrapper, which knows GB):
        [0:B)    bond features
        [B]      gather column of the neighbor atom      =        (g%GB)*N + nbr_idx
        [B+1]    gather column of the center (self) atom = GB*N + (g%GB)*N + n
        [B+2]    padding filter (0/1)
    """
    NM = N * M
    A2 = 2 * A

    atom3 = atom_ref[...]                                    # (GB, N, A)  f32
    atom_flat = atom3.reshape(GB * N, A)

    nbr_flat = nbr_ref[...].reshape(GB * NM, B + 3)          # f32
    bond = nbr_flat[:, :B]
    nbr_col = nbr_flat[:, B:B + 1].astype(jnp.int32)         # (GB*NM, 1)
    self_col = nbr_flat[:, B + 1:B + 2].astype(jnp.int32)    # (GB*NM, 1)
    mask3 = nbr_flat[:, B + 2:B + 3].reshape(GB, NM, 1)      # (GB, NM, 1)

    vec = vec_ref[...]                                        # (5, 2A) f32
    bias, g1, be1 = vec[0:1, :], vec[1:2, :], vec[2:3, :]
    g2, be2 = vec[3:4, :A], vec[4:5, :A]

    # fc_full, part 1: fused self|neighbor projection (one 128-lane-wide matmul) and
    # bond projection.  bf16 MXU inputs, f32 accumulation; elementwise math stays f32.
    proj = jnp.dot(atom_flat.astype(jnp.bfloat16), wsn_ref[...],
                   preferred_element_type=jnp.float32)        # (GB*N, 4A)
    bond_proj = jnp.dot(bond.astype(jnp.bfloat16), wb_ref[...],
                        preferred_element_type=jnp.float32)   # (GB*NM, 2A)

    # fc_full, part 2: ONE block-diagonal one-hot matmul performs the data-dependent
    # neighbor gather AND the 'self' expansion (columns [0, GB*N) select the neighbor
    # projection, columns [GB*N, 2*GB*N) select the self projection).
    # TODO(synk): quadratic in G_BLK*N; for graphs with hundreds of atoms switch to a
    # scalar-prefetch / DMA gather.  Out-of-range indices are silently dropped (zero),
    # unlike torch indexing which would raise.
    gather_rhs = jnp.concatenate([proj[:, A2:], proj[:, :A2]],
                                 axis=0).astype(jnp.bfloat16)  # (2*GB*N, 2A)
    col = lax.broadcasted_iota(jnp.int32, (GB * NM, 2 * GB * N), 1)
    one_hot = ((col == nbr_col) | (col == self_col)).astype(jnp.bfloat16)
    gath = jnp.dot(one_hot, gather_rhs,
                   preferred_element_type=jnp.float32)         # (GB*NM, 2A) = self + nbr

    gated = (gath + bond_proj + bias).reshape(GB, NM, A2)      # (GB, NM, 2A)

    # bn1: per-graph training-mode stats over rows with padding filter == 1 (biased var).
    # Masked-out rows are normalized too, but they are zeroed by the mask below, so the
    # output matches torch (which leaves them un-normalized, then multiplies by 0).
    cnt = jnp.maximum(jnp.sum(mask3, axis=1, keepdims=True), 1.0)   # (GB,1,1), all-pad guard
    inv_cnt = pl.reciprocal(cnt)
    mu = jnp.sum(gated * mask3, axis=1, keepdims=True) * inv_cnt
    var = jnp.sum(jnp.square(gated - mu) * mask3, axis=1, keepdims=True) * inv_cnt
    gated = (gated - mu) * lax.rsqrt(var + _EPS) * g1 + be1

    # Gate / core halves: static lane split inside the 64-lane tile.
    nbr_filter = pl.reciprocal(1.0 + jnp.exp(-gated[..., :A]), approx=True)   # sigmoid (EUP)
    nbr_core = _softplus(gated[..., A:])
    prod = nbr_filter * nbr_core * mask3                                       # (GB, NM, A)

    # Sum over the M neighbor slots of each atom: M aligned sublane slices + VPU adds.
    nbr_sumed = prod[:, 0:N, :]
    for m in range(1, M):
        nbr_sumed = nbr_sumed + prod[:, m * N:(m + 1) * N, :]                  # (GB, N, A)

    # bn2: per-graph training-mode stats over the N atoms (biased variance).
    mu2 = jnp.mean(nbr_sumed, axis=1, keepdims=True)
    var2 = jnp.mean(jnp.square(nbr_sumed - mu2), axis=1, keepdims=True)
    nbr_sumed = (nbr_sumed - mu2) * lax.rsqrt(var2 + _EPS) * g2 + be2

    out3 = _softplus(atom3 + nbr_sumed)                                        # (GB, N, A)

    # Lane-dense store: concatenate the GB graphs along lanes -> (N, GB*A) so the output
    # store is an unmasked vst (128 lanes at the default block).  The wrapper undoes this
    # layout with a cheap XLA reshape/transpose.
    o_ref[...] = jnp.concatenate([out3[g] for g in range(GB)], axis=-1)


def _pick_g_blk(G, NM):
    """Stack graphs up to ~256 matmul rows per step, but keep >= 2 grid steps whenever
    the batch allows (megacore / v7x).  v5e prefers ~128 rows; pass g_blk explicitly
    to tune per generation."""
    gb = max(1, min(G, max(1, 256 // NM)))
    while gb > 1 and -(-G // gb) < 2:
        gb = max(1, gb // 2)
    return gb


@functools.partial(jax.jit, static_argnames=("g_blk",))
def conv_layer_forward_batched(atom_in_fea, nbr_fea, nbr_fea_idx, padding_filter, params,
                               *, g_blk=None):
    """Batched Pallas forward.  Each graph is one independent ConvLayer.forward call
    (its own training-mode batch-norm statistics), i.e. vmap of the PyTorch module
    over graphs; GB graphs are packed per grid step (sublane-stacked) for the MXU."""
    G, N, A = atom_in_fea.shape
    _, _, M, B = nbr_fea.shape
    NM = N * M
    GB = int(g_blk) if g_blk is not None else _pick_g_blk(G, NM)
    n_blk = -(-G // GB)
    Gp = n_blk * GB

    if Gp != G:  # pad the batch; padded graphs have mask == 0 and are sliced off below
        p = Gp - G
        atom_in_fea = jnp.pad(atom_in_fea, ((0, p), (0, 0), (0, 0)))
        nbr_fea = jnp.pad(nbr_fea, ((0, p), (0, 0), (0, 0), (0, 0)))
        nbr_fea_idx = jnp.pad(nbr_fea_idx, ((0, p), (0, 0), (0, 0)))
        padding_filter = jnp.pad(padding_filter, ((0, p), (0, 0), (0, 0)))

    atom = atom_in_fea.astype(jnp.float32)
    # m-major flattened row order (row = m*N + n) so the in-kernel pooling is
    # sublane-aligned; indices + mask ride as extra lanes of the bond tensor so each
    # grid step issues 2 per-graph DMAs instead of 4.
    idx_t = jnp.transpose(nbr_fea_idx, (0, 2, 1)).reshape(Gp, NM, 1).astype(jnp.float32)
    nbr_t = jnp.transpose(nbr_fea, (0, 2, 1, 3)).reshape(Gp, NM, B).astype(jnp.float32)
    mask_t = jnp.transpose(padding_filter, (0, 2, 1)).reshape(Gp, NM, 1).astype(jnp.float32)

    # Gather-column encoding for the in-kernel one-hot (exactly representable in f32).
    g_off = (jnp.arange(Gp) % GB * N).astype(jnp.float32).reshape(Gp, 1, 1)
    atom_row = jnp.tile(jnp.arange(N, dtype=jnp.float32), M).reshape(1, NM, 1)
    nbr_col = idx_t + g_off                                   # neighbor's in-block row
    self_col = (GB * N) + g_off + atom_row                    # center atom's in-block row
    nbr_aug = jnp.concatenate([nbr_t, nbr_col, self_col, mask_t], axis=-1)   # (Gp, NM, B+3)

    W = params["W"].astype(jnp.float32)                       # (2A+B, 2A) == torch weight.T
    w_sn = jnp.concatenate([W[:A, :], W[A:2 * A, :]], axis=1).astype(jnp.bfloat16)  # (A, 4A)
    w_bond = W[2 * A:, :].astype(jnp.bfloat16)                                      # (B, 2A)
    padA = jnp.zeros((A,), jnp.float32)
    vec = jnp.stack([
        params["b"], params["gamma1"], params["beta1"],
        jnp.concatenate([params["gamma2"], padA]),
        jnp.concatenate([params["beta2"], padA]),
    ], axis=0).astype(jnp.float32)                            # (5, 2A)

    kernel = functools.partial(_convlayer_kernel, GB=GB, N=N, M=M, A=A, B=B)
    out = pl.pallas_call(
        kernel,
        out_shape=jax.ShapeDtypeStruct((n_blk, N, GB * A), jnp.float32),
        grid=(n_blk,),
        in_specs=[
            pl.BlockSpec((GB, N, A), lambda g: (g, 0, 0)),         # atom features
            pl.BlockSpec((GB, NM, B + 3), lambda g: (g, 0, 0)),    # bond | nbr_col | self_col | mask
            pl.BlockSpec((A, 4 * A), lambda g: (0, 0)),            # fused self|nbr weight (resident)
            pl.BlockSpec((B, 2 * A), lambda g: (0, 0)),            # bond weight (resident)
            pl.BlockSpec((5, 2 * A), lambda g: (0, 0)),            # bias / BN vectors (resident)
        ],
        out_specs=pl.BlockSpec((None, N, GB * A), lambda g: (g, 0, 0)),
        compiler_params=pltpu.CompilerParams(
            dimension_semantics=("parallel",),     # shard graph blocks across TCs (v7x)
            vmem_limit_bytes=32 * 1024 * 1024,
        ),
        # Further sweep knob (not applied): pipeline_mode=pl.Buffered(3) on the two
        # per-graph in_specs if DMA issue latency shows up once compute is this short.
    )(atom, nbr_aug, w_sn, w_bond, vec)

    # Undo the lane-dense layout: (n_blk, N, GB*A) -> (Gp, N, A), drop batch padding.
    out = out.reshape(n_blk, N, GB, A).transpose(0, 2, 1, 3).reshape(Gp, N, A)
    return out[:G]


def conv_layer_forward(atom_in_fea, nbr_fea, nbr_fea_idx, padding_filter, params):
    """Single-graph entry point matching the original module signature."""
    out = conv_layer_forward_batched(atom_in_fea[None], nbr_fea[None],
                                     nbr_fea_idx[None], padding_filter[None], params)
    return out[0]


def conv_layer_reference(atom_in_fea, nbr_fea, nbr_fea_idx, padding_filter, params):
    """Pure-JAX reference mirroring the PyTorch forward (training-mode batch norm)."""
    N, A = atom_in_fea.shape
    _, M, B = nbr_fea.shape
    W, b = params["W"], params["b"]
    atom_nbr = atom_in_fea[nbr_fea_idx]                                   # (N, M, A)
    self_fea = jnp.broadcast_to(atom_in_fea[:, None, :], (N, M, A))
    total = jnp.concatenate([self_fea, atom_nbr, nbr_fea], axis=2)        # (N, M, 2A+B)
    g = total.reshape(N * M, 2 * A + B) @ W + b                           # (NM, 2A)

    mask = padding_filter.reshape(-1).astype(jnp.float32)
    cnt = mask.sum()
    mu = (g * mask[:, None]).sum(0) / cnt
    var = (jnp.square(g - mu) * mask[:, None]).sum(0) / cnt
    g_bn = (g - mu) / jnp.sqrt(var + _EPS) * params["gamma1"] + params["beta1"]
    g_bn = g_bn.reshape(N, M, 2 * A)

    nbr_filter = 1.0 / (1.0 + jnp.exp(-g_bn[..., :A]))
    nbr_core = _softplus(g_bn[..., A:])
    nbr_sumed = (nbr_filter * nbr_core
                 * padding_filter[..., None].astype(jnp.float32)).sum(axis=1)

    mu2 = nbr_sumed.mean(0)
    var2 = jnp.square(nbr_sumed - mu2).mean(0)
    nbr_sumed = (nbr_sumed - mu2) / jnp.sqrt(var2 + _EPS) * params["gamma2"] + params["beta2"]
    return _softplus(atom_in_fea + nbr_sumed)


if __name__ == "__main__":
    # G independent graphs, each with N atoms, M neighbor slots, atom_fea_len=A, nbr_fea_len=B.
    A, B, N, M, G = 32, 16, 8, 4, 8
    key = jax.random.PRNGKey(0)
    k1, k2, k3, k4, k5, k6 = jax.random.split(key, 6)

    atom_in_fea = jax.random.normal(k1, (G, N, A), jnp.float32)
    nbr_fea = jax.random.normal(k2, (G, N, M, B), jnp.float32)
    nbr_fea_idx = jax.random.randint(k3, (G, N, M), 0, N)
    n_valid = jax.random.randint(k4, (G, N, 1), 1, M + 1)                 # >= 1 valid neighbor
    padding_filter = (jnp.arange(M)[None, None, :] < n_valid).astype(jnp.float32)

    # nn.Linear(2A+B, 2A) (stored transposed), BatchNorm1d(2A), BatchNorm1d(A), torch-style init.
    fan_in = 2 * A + B
    bound = 1.0 / np.sqrt(fan_in)
    params = {
        "W": jax.random.uniform(k5, (fan_in, 2 * A), jnp.float32, -bound, bound),
        "b": jax.random.uniform(k6, (2 * A,), jnp.float32, -bound, bound),
        "gamma1": jnp.ones((2 * A,), jnp.float32),
        "beta1": jnp.zeros((2 * A,), jnp.float32),
        "gamma2": jnp.ones((A,), jnp.float32),
        "beta2": jnp.zeros((A,), jnp.float32),
    }

    out = conv_layer_forward_batched(atom_in_fea, nbr_fea, nbr_fea_idx, padding_filter, params)
    out = jax.block_until_ready(out)

    ref = jax.vmap(lambda a, nf, ni, pf: conv_layer_reference(a, nf, ni, pf, params))(
        atom_in_fea, nbr_fea, nbr_fea_idx, padding_filter)
    # Tolerance reflects intentional bf16 MXU inputs (f32 accumulation) + approx sigmoid.
    np.testing.assert_allclose(np.asarray(out), np.asarray(ref), rtol=2e-2, atol=2e-2)

    # Single-graph entry point (original module signature) shares the same kernel.
    out0 = conv_layer_forward(atom_in_fea[0], nbr_fea[0], nbr_fea_idx[0],
                              padding_filter[0], params)
    out0 = jax.block_until_ready(out0)
    np.testing.assert_allclose(np.asarray(out0), np.asarray(ref[0]), rtol=2e-2, atol=2e-2)

    print("KERNEL_OK")
</pallas_src>

<mosaic_0001>
module attributes {stable_mosaic.version = 11 : i64} {
  func.func @_convlayer_kernel(%arg0: i32, %arg1: memref<4x8x32xf32, #tpu.memory_space<vmem>>, %arg2: memref<4x32x19xf32, #tpu.memory_space<vmem>>, %arg3: memref<32x128xbf16, #tpu.memory_space<vmem>>, %arg4: memref<16x64xbf16, #tpu.memory_space<vmem>>, %arg5: memref<5x64xf32, #tpu.memory_space<vmem>>, %arg6: memref<1x8x128xf32, #tpu.memory_space<vmem>>) attributes {dimension_semantics = [#tpu.dimension_semantics<parallel>], iteration_bounds = array<i64: 2>, scalar_prefetch = 0 : i64, scratch_operands = 0 : i64, tpu.core_type = #tpu.core_type<tc>, window_params = [{transform_indices = @transform_0, window_bounds = array<i64: 4, 8, 32>}, {transform_indices = @transform_1, window_bounds = array<i64: 4, 32, 19>}, {pipeline_mode = #tpu.pipeline_mode<synchronous>, transform_indices = @transform_2, window_bounds = array<i64: 32, 128>}, {pipeline_mode = #tpu.pipeline_mode<synchronous>, transform_indices = @transform_3, window_bounds = array<i64: 16, 64>}, {pipeline_mode = #tpu.pipeline_mode<synchronous>, transform_indices = @transform_4, window_bounds = array<i64: 5, 64>}, {transform_indices = @transform_5, window_bounds = array<i64: 1, 8, 128>}]} {
    %c0 = arith.constant 0 : index
    %c0_0 = arith.constant 0 : index
    %c0_1 = arith.constant 0 : index
    %0 = vector.load %arg1[%c0, %c0_0, %c0_1] : memref<4x8x32xf32, #tpu.memory_space<vmem>>, vector<4x8x32xf32>
    %1 = vector.shape_cast %0 : vector<4x8x32xf32> to vector<32x32xf32>
    %c0_2 = arith.constant 0 : index
    %c0_3 = arith.constant 0 : index
    %c0_4 = arith.constant 0 : index
    %2 = vector.load %arg2[%c0_2, %c0_3, %c0_4] : memref<4x32x19xf32, #tpu.memory_space<vmem>>, vector<4x32x19xf32>
    %3 = vector.shape_cast %2 : vector<4x32x19xf32> to vector<128x19xf32>
    %4 = vector.extract_strided_slice %3 {offsets = [0, 0], sizes = [128, 16], strides = [1, 1]} : vector<128x19xf32> to vector<128x16xf32>
    %5 = vector.extract_strided_slice %3 {offsets = [0, 16], sizes = [128, 1], strides = [1, 1]} : vector<128x19xf32> to vector<128x1xf32>
    %6 = arith.fptosi %5 : vector<128x1xf32> to vector<128x1xi32>
    %7 = vector.extract_strided_slice %3 {offsets = [0, 17], sizes = [128, 1], strides = [1, 1]} : vector<128x19xf32> to vector<128x1xf32>
    %8 = arith.fptosi %7 : vector<128x1xf32> to vector<128x1xi32>
    %9 = vector.extract_strided_slice %3 {offsets = [0, 18], sizes = [128, 1], strides = [1, 1]} : vector<128x19xf32> to vector<128x1xf32>
    %10 = vector.shape_cast %9 : vector<128x1xf32> to vector<4x32x1xf32>
    %c0_5 = arith.constant 0 : index
    %c0_6 = arith.constant 0 : index
    %11 = vector.load %arg5[%c0_5, %c0_6] : memref<5x64xf32, #tpu.memory_space<vmem>>, vector<5x64xf32>
    %12 = vector.extract_strided_slice %11 {offsets = [0, 0], sizes = [1, 64], strides = [1, 1]} : vector<5x64xf32> to vector<1x64xf32>
    %13 = vector.extract_strided_slice %11 {offsets = [1, 0], sizes = [1, 64], strides = [1, 1]} : vector<5x64xf32> to vector<1x64xf32>
    %14 = vector.extract_strided_slice %11 {offsets = [2, 0], sizes = [1, 64], strides = [1, 1]} : vector<5x64xf32> to vector<1x64xf32>
    %15 = vector.extract_strided_slice %11 {offsets = [3, 0], sizes = [1, 32], strides = [1, 1]} : vector<5x64xf32> to vector<1x32xf32>
    %16 = vector.extract_strided_slice %11 {offsets = [4, 0], sizes = [1, 32], strides = [1, 1]} : vector<5x64xf32> to vector<1x32xf32>
    %17 = arith.truncf %1 : vector<32x32xf32> to vector<32x32xbf16>
    %c0_7 = arith.constant 0 : index
    %c0_8 = arith.constant 0 : index
    %18 = vector.load %arg3[%c0_7, %c0_8] : memref<32x128xbf16, #tpu.memory_space<vmem>>, vector<32x128xbf16>
    %cst = arith.constant dense<0.000000e+00> : vector<32x128xf32>
    %19 = tpu.matmul %17, %18, %cst {dimension_numbers = #tpu.dot_dimension_numbers<[1], [0], [0], [1], [0, 0, 1, 1], [], []>} : vector<32x32xbf16>, vector<32x128xbf16>, vector<32x128xf32> -> vector<32x128xf32>
    %20 = arith.truncf %4 : vector<128x16xf32> to vector<128x16xbf16>
    %c0_9 = arith.constant 0 : index
    %c0_10 = arith.constant 0 : index
    %21 = vector.load %arg4[%c0_9, %c0_10] : memref<16x64xbf16, #tpu.memory_space<vmem>>, vector<16x64xbf16>
    %cst_11 = arith.constant dense<0.000000e+00> : vector<128x64xf32>
    %22 = tpu.matmul %20, %21, %cst_11 {dimension_numbers = #tpu.dot_dimension_numbers<[1], [0], [0], [1], [0, 0, 1, 1], [], []>} : vector<128x16xbf16>, vector<16x64xbf16>, vector<128x64xf32> -> vector<128x64xf32>
    %23 = vector.extract_strided_slice %19 {offsets = [0, 64], sizes = [32, 64], strides = [1, 1]} : vector<32x128xf32> to vector<32x64xf32>
    %24 = vector.extract_strided_slice %19 {offsets = [0, 0], sizes = [32, 64], strides = [1, 1]} : vector<32x128xf32> to vector<32x64xf32>
    %25 = tpu.concatenate %23, %24 in 0 : vector<32x64xf32>, vector<32x64xf32> -> vector<64x64xf32>
    %26 = arith.truncf %25 : vector<64x64xf32> to vector<64x64xbf16>
    %27 = tpu.iota {dimensions = array<i32: 1>} : vector<128x64xi32>
    %28 = vector.broadcast %6 : vector<128x1xi32> to vector<128x64xi32>
    %29 = arith.cmpi eq, %27, %28 : vector<128x64xi32>
    %30 = vector.broadcast %8 : vector<128x1xi32> to vector<128x64xi32>
    %31 = arith.cmpi eq, %27, %30 : vector<128x64xi32>
    %32 = arith.ori %29, %31 : vector<128x64xi1>
    %33 = arith.extui %32 : vector<128x64xi1> to vector<128x64xi32>
    %34 = arith.sitofp %33 : vector<128x64xi32> to vector<128x64xf32>
    %35 = arith.truncf %34 : vector<128x64xf32> to vector<128x64xbf16>
    %cst_12 = arith.constant dense<0.000000e+00> : vector<128x64xf32>
    %36 = tpu.matmul %35, %26, %cst_12 {dimension_numbers = #tpu.dot_dimension_numbers<[1], [0], [0], [1], [0, 0, 1, 1], [], []>} : vector<128x64xbf16>, vector<64x64xbf16>, vector<128x64xf32> -> vector<128x64xf32>
    %37 = arith.addf %36, %22 : vector<128x64xf32>
    %38 = vector.broadcast %12 : vector<1x64xf32> to vector<128x64xf32>
    %39 = arith.addf %37, %38 : vector<128x64xf32>
    %40 = vector.shape_cast %39 : vector<128x64xf32> to vector<4x32x64xf32>
    %cst_13 = arith.constant dense<0.000000e+00> : vector<4x1xf32>
    %41 = vector.multi_reduction <add>, %10, %cst_13 [1] : vector<4x32x1xf32> to vector<4x1xf32>
    %42 = vector.shape_cast %41 : vector<4x1xf32> to vector<4x1x1xf32>
    %cst_14 = arith.constant 1.000000e+00 : f32
    %43 = vector.broadcast %cst_14 : f32 to vector<4x1x1xf32>
    %44 = arith.maximumf %42, %43 : vector<4x1x1xf32>
    %45 = tpu.reciprocal %44 : vector<4x1x1xf32> -> vector<4x1x1xf32>
    %46 = vector.broadcast %10 : vector<4x32x1xf32> to vector<4x32x64xf32>
    %47 = arith.mulf %40, %46 : vector<4x32x64xf32>
    %cst_15 = arith.constant dense<0.000000e+00> : vector<4x64xf32>
    %48 = vector.multi_reduction <add>, %47, %cst_15 [1] : vector<4x32x64xf32> to vector<4x64xf32>
    %49 = vector.shape_cast %48 : vector<4x64xf32> to vector<4x1x64xf32>
    %50 = vector.broadcast %45 : vector<4x1x1xf32> to vector<4x1x64xf32>
    %51 = arith.mulf %49, %50 : vector<4x1x64xf32>
    %52 = vector.broadcast %51 : vector<4x1x64xf32> to vector<4x32x64xf32>
    %53 = arith.subf %40, %52 : vector<4x32x64xf32>
    %54 = arith.mulf %53, %53 : vector<4x32x64xf32>
    %55 = vector.broadcast %10 : vector<4x32x1xf32> to vector<4x32x64xf32>
    %56 = arith.mulf %54, %55 : vector<4x32x64xf32>
    %cst_16 = arith.constant dense<0.000000e+00> : vector<4x64xf32>
    %57 = vector.multi_reduction <add>, %56, %cst_16 [1] : vector<4x32x64xf32> to vector<4x64xf32>
    %58 = vector.shape_cast %57 : vector<4x64xf32> to vector<4x1x64xf32>
    %59 = vector.broadcast %45 : vector<4x1x1xf32> to vector<4x1x64xf32>
    %60 = arith.mulf %58, %59 : vector<4x1x64xf32>
    %61 = vector.broadcast %51 : vector<4x1x64xf32> to vector<4x32x64xf32>
    %62 = arith.subf %40, %61 : vector<4x32x64xf32>
    %cst_17 = arith.constant 9.99999974E-6 : f32
    %63 = vector.broadcast %cst_17 : f32 to vector<4x1x64xf32>
    %64 = arith.addf %60, %63 : vector<4x1x64xf32>
    %65 = math.rsqrt %64 : vector<4x1x64xf32>
    %66 = vector.broadcast %65 : vector<4x1x64xf32> to vector<4x32x64xf32>
    %67 = arith.mulf %62, %66 : vector<4x32x64xf32>
    %68 = vector.shape_cast %13 : vector<1x64xf32> to vector<1x1x64xf32>
    %69 = vector.broadcast %68 : vector<1x1x64xf32> to vector<4x32x64xf32>
    %70 = arith.mulf %67, %69 : vector<4x32x64xf32>
    %71 = vector.shape_cast %14 : vector<1x64xf32> to vector<1x1x64xf32>
    %72 = vector.broadcast %71 : vector<1x1x64xf32> to vector<4x32x64xf32>
    %73 = arith.addf %70, %72 : vector<4x32x64xf32>
    %74 = vector.extract_strided_slice %73 {offsets = [0, 0, 0], sizes = [4, 32, 32], strides = [1, 1, 1]} : vector<4x32x64xf32> to vector<4x32x32xf32>
    %cst_18 = arith.constant 0.000000e+00 : f32
    %75 = vector.broadcast %cst_18 : f32 to vector<4x32x32xf32>
    %76 = arith.subf %75, %74 : vector<4x32x32xf32>
    %77 = math.exp %76 : vector<4x32x32xf32>
    %cst_19 = arith.constant 1.000000e+00 : f32
    %78 = vector.broadcast %cst_19 : f32 to vector<4x32x32xf32>
    %79 = arith.addf %78, %77 : vector<4x32x32xf32>
    %80 = tpu.reciprocal %79 {approx = true} : vector<4x32x32xf32> -> vector<4x32x32xf32>
    %81 = vector.extract_strided_slice %73 {offsets = [0, 0, 32], sizes = [4, 32, 32], strides = [1, 1, 1]} : vector<4x32x64xf32> to vector<4x32x32xf32>
    %cst_20 = arith.constant 2.000000e+01 : f32
    %82 = vector.broadcast %cst_20 : f32 to vector<4x32x32xf32>
    %83 = arith.cmpf ogt, %81, %82 : vector<4x32x32xf32>
    %cst_21 = arith.constant 2.000000e+01 : f32
    %84 = vector.broadcast %cst_21 : f32 to vector<4x32x32xf32>
    %85 = arith.minimumf %81, %84 : vector<4x32x32xf32>
    %86 = math.exp %85 : vector<4x32x32xf32>
    %cst_22 = arith.constant 1.000000e+00 : f32
    %87 = vector.broadcast %cst_22 : f32 to vector<4x32x32xf32>
    %88 = arith.addf %87, %86 : vector<4x32x32xf32>
    %89 = math.log %88 : vector<4x32x32xf32>
    %90 = arith.select %83, %81, %89 : vector<4x32x32xi1>, vector<4x32x32xf32>
    %91 = arith.mulf %80, %90 : vector<4x32x32xf32>
    %92 = vector.broadcast %10 : vector<4x32x1xf32> to vector<4x32x32xf32>
    %93 = arith.mulf %91, %92 : vector<4x32x32xf32>
    %94 = vector.extract_strided_slice %93 {offsets = [0, 0, 0], sizes = [4, 8, 32], strides = [1, 1, 1]} : vector<4x32x32xf32> to vector<4x8x32xf32>
    %95 = vector.extract_strided_slice %93 {offsets = [0, 8, 0], sizes = [4, 8, 32], strides = [1, 1, 1]} : vector<4x32x32xf32> to vector<4x8x32xf32>
    %96 = arith.addf %94, %95 : vector<4x8x32xf32>
    %97 = vector.extract_strided_slice %93 {offsets = [0, 16, 0], sizes = [4, 8, 32], strides = [1, 1, 1]} : vector<4x32x32xf32> to vector<4x8x32xf32>
    %98 = arith.addf %96, %97 : vector<4x8x32xf32>
    %99 = vector.extract_strided_slice %93 {offsets = [0, 24, 0], sizes = [4, 8, 32], strides = [1, 1, 1]} : vector<4x32x32xf32> to vector<4x8x32xf32>
    %100 = arith.addf %98, %99 : vector<4x8x32xf32>
    %cst_23 = arith.constant dense<0.000000e+00> : vector<4x32xf32>
    %101 = vector.multi_reduction <add>, %100, %cst_23 [1] : vector<4x8x32xf32> to vector<4x32xf32>
    %102 = vector.shape_cast %101 : vector<4x32xf32> to vector<4x1x32xf32>
    %cst_24 = arith.constant 8.000000e+00 : f32
    %103 = vector.broadcast %cst_24 : f32 to vector<4x1x32xf32>
    %104 = arith.divf %102, %103 : vector<4x1x32xf32>
    %105 = vector.broadcast %104 : vector<4x1x32xf32> to vector<4x8x32xf32>
    %106 = arith.subf %100, %105 : vector<4x8x32xf32>
    %107 = arith.mulf %106, %106 : vector<4x8x32xf32>
    %cst_25 = arith.constant dense<0.000000e+00> : vector<4x32xf32>
    %108 = vector.multi_reduction <add>, %107, %cst_25 [1] : vector<4x8x32xf32> to vector<4x32xf32>
    %109 = vector.shape_cast %108 : vector<4x32xf32> to vector<4x1x32xf32>
    %cst_26 = arith.constant 8.000000e+00 : f32
    %110 = vector.broadcast %cst_26 : f32 to vector<4x1x32xf32>
    %111 = arith.divf %109, %110 : vector<4x1x32xf32>
    %112 = vector.broadcast %104 : vector<4x1x32xf32> to vector<4x8x32xf32>
    %113 = arith.subf %100, %112 : vector<4x8x32xf32>
    %cst_27 = arith.constant 9.99999974E-6 : f32
    %114 = vector.broadcast %cst_27 : f32 to vector<4x1x32xf32>
    %115 = arith.addf %111, %114 : vector<4x1x32xf32>
    %116 = math.rsqrt %115 : vector<4x1x32xf32>
    %117 = vector.broadcast %116 : vector<4x1x32xf32> to vector<4x8x32xf32>
    %118 = arith.mulf %113, %117 : vector<4x8x32xf32>
    %119 = vector.shape_cast %15 : vector<1x32xf32> to vector<1x1x32xf32>
    %120 = vector.broadcast %119 : vector<1x1x32xf32> to vector<4x8x32xf32>
    %121 = arith.mulf %118, %120 : vector<4x8x32xf32>
    %122 = vector.shape_cast %16 : vector<1x32xf32> to vector<1x1x32xf32>
    %123 = vector.broadcast %122 : vector<1x1x32xf32> to vector<4x8x32xf32>
    %124 = arith.addf %121, %123 : vector<4x8x32xf32>
    %125 = arith.addf %0, %124 : vector<4x8x32xf32>
    %cst_28 = arith.constant 2.000000e+01 : f32
    %126 = vector.broadcast %cst_28 : f32 to vector<4x8x32xf32>
    %127 = arith.cmpf ogt, %125, %126 : vector<4x8x32xf32>
    %cst_29 = arith.constant 2.000000e+01 : f32
    %128 = vector.broadcast %cst_29 : f32 to vector<4x8x32xf32>
    %129 = arith.minimumf %125, %128 : vector<4x8x32xf32>
    %130 = math.exp %129 : vector<4x8x32xf32>
    %cst_30 = arith.constant 1.000000e+00 : f32
    %131 = vector.broadcast %cst_30 : f32 to vector<4x8x32xf32>
    %132 = arith.addf %131, %130 : vector<4x8x32xf32>
    %133 = math.log %132 : vector<4x8x32xf32>
    %134 = arith.select %127, %125, %133 : vector<4x8x32xi1>, vector<4x8x32xf32>
    %135 = vector.extract_strided_slice %134 {offsets = [0, 0, 0], sizes = [1, 8, 32], strides = [1, 1, 1]} : vector<4x8x32xf32> to vector<1x8x32xf32>
    %136 = vector.shape_cast %135 : vector<1x8x32xf32> to vector<8x32xf32>
    %137 = vector.extract_strided_slice %134 {offsets = [1, 0, 0], sizes = [1, 8, 32], strides = [1, 1, 1]} : vector<4x8x32xf32> to vector<1x8x32xf32>
    %138 = vector.shape_cast %137 : vector<1x8x32xf32> to vector<8x32xf32>
    %139 = vector.extract_strided_slice %134 {offsets = [2, 0, 0], sizes = [1, 8, 32], strides = [1, 1, 1]} : vector<4x8x32xf32> to vector<1x8x32xf32>
    %140 = vector.shape_cast %139 : vector<1x8x32xf32> to vector<8x32xf32>
    %141 = vector.extract_strided_slice %134 {offsets = [3, 0, 0], sizes = [1, 8, 32], strides = [1, 1, 1]} : vector<4x8x32xf32> to vector<1x8x32xf32>
    %142 = vector.shape_cast %141 : vector<1x8x32xf32> to vector<8x32xf32>
    %143 = tpu.concatenate %136, %138, %140, %142 in 1 : vector<8x32xf32>, vector<8x32xf32>, vector<8x32xf32>, vector<8x32xf32> -> vector<8x128xf32>
    %c0_31 = arith.constant 0 : index
    %c0_32 = arith.constant 0 : index
    %c0_33 = arith.constant 0 : index
    %144 = vector.load %arg6[%c0_31, %c0_32, %c0_33] : memref<1x8x128xf32, #tpu.memory_space<vmem>>, vector<1x8x128xf32>
    %145 = vector.shape_cast %144 : vector<1x8x128xf32> to vector<8x128xf32>
    %146 = vector.shape_cast %143 : vector<8x128xf32> to vector<1x8x128xf32>
    tpu.vector_store %arg6[%c0_31, %c0_32, %c0_33], %146 {strides = array<i32>} : memref<1x8x128xf32, #tpu.memory_space<vmem>>, vector<1x8x128xf32>,
    return
  }
  func.func @transform_0(%arg0: i32) -> (i32, i32, i32) {
    %c0_i32 = arith.constant 0 : i32
    %c0_i32_0 = arith.constant 0 : i32
    %c0_i32_1 = arith.constant 0 : i32
    return %arg0, %c0_i32, %c0_i32_0 : i32, i32, i32
  }
  func.func @transform_1(%arg0: i32) -> (i32, i32, i32) {
    %c0_i32 = arith.constant 0 : i32
    %c0_i32_0 = arith.constant 0 : i32
    %c0_i32_1 = arith.constant 0 : i32
    return %arg0, %c0_i32, %c0_i32_0 : i32, i32, i32
  }
  func.func @transform_2(%arg0: i32) -> (i32, i32) {
    %c0_i32 = arith.constant 0 : i32
    %c0_i32_0 = arith.constant 0 : i32
    %c0_i32_1 = arith.constant 0 : i32
    return %c0_i32, %c0_i32_0 : i32, i32
  }
  func.func @transform_3(%arg0: i32) -> (i32, i32) {
    %c0_i32 = arith.constant 0 : i32
    %c0_i32_0 = arith.constant 0 : i32
    %c0_i32_1 = arith.constant 0 : i32
    return %c0_i32, %c0_i32_0 : i32, i32
  }
  func.func @transform_4(%arg0: i32) -> (i32, i32) {
    %c0_i32 = arith.constant 0 : i32
    %c0_i32_0 = arith.constant 0 : i32
    %c0_i32_1 = arith.constant 0 : i32
    return %c0_i32, %c0_i32_0 : i32, i32
  }
  func.func @transform_5(%arg0: i32) -> (i32, i32, i32) {
    %c0_i32 = arith.constant 0 : i32
    %c0_i32_0 = arith.constant 0 : i32
    %c0_i32_1 = arith.constant 0 : i32
    return %arg0, %c0_i32, %c0_i32_0 : i32, i32, i32
  }
}

</mosaic_0001>

<bundles_post_ra>
// kernel: conv_layer_forward_batched.1
= control target key start
LH: loop header
LB: loop body
LE: loop exit
PB: predicated region body
PF: predicated region fallthrough
CT: control target
= control target key end

     0   :  { %s2224_s18 = smov 0   ;;  %s3008_s0 = inlined_call_operand.vmem [shape: f32[8,8,32], index: 0, kind: input, shape index: {}]   ;;  %s3009_s1 = inlined_call_operand.vmem [shape: f32[8,32,19], index: 1, kind: input, shape index: {}]   ;;  %s3010_s2 = inlined_call_operand.vmem [shape: bf16[32,128], index: 2, kind: input, shape index: {}]   ;;  %s3011_s3 = inlined_call_operand.vmem [shape: bf16[16,64], index: 3, kind: input, shape index: {}]   ;;  %s3012_s4 = inlined_call_operand.vmem [shape: f32[5,64], index: 4, kind: input, shape index: {}]   ;;  %s3013_s5 = inlined_call_operand.vmem [shape: f32[2,8,128], index: 5, kind: output, shape index: {}]  }
   0x1 LB: > { %s2230_s19 = sadd.s32 4294967295, %s2185_s18   ;;  %p1804_p0 = scmp.ge.s32.totalorder %s2185_s18, 1  ;;  %s2185_s18 = sphi %s2224_s18, %s15_s18  }
   0x2   : > { %p200_p1 = scmp.lt.s32.totalorder %s2185_s18, 3 }
   0x4   : > { %p201_p2 = pnand %p1804_p0, %p200_p1 }
   0x5   : > { %s1805_s22 = sshll.u32 (!%p201_p2), %s2230_s19, 2  ;;  %s2189_s8 = smov (!%p201_p2), 64  }
   0x6   : > { %204 = sbr.rel (%p201_p2) target bundleno = 1166 (0x48e), region = 40  ;;  %p234_p3 = scmp.lt.s32.totalorder (!%p201_p2), %s1805_s22, 7 }
   0x7   : > { %s2192_s13 = smov (!%p201_p2), 96   ;;  %s2193_s16 = smov (!%p201_p2), 32  }
   0x8   : > { %p246_p4 = scmp.lt.s32.totalorder (!%p201_p2), %s2230_s19, 1 }
   0xb   : > { %v2003_v0 = vld [vmem:[%s3010_s2 + $0x8] sm:$0xff]   ;;  %v2004_v1 = vld [vmem:[%s3010_s2] sm:$0xff]   ;;  %s3015_s22 = smov (!%p234_p3, %s1805_s22), 7  ;;  %v2187_v2 = vmov 16   ;;  %vm306_vm0 = vcmask 261120   ;;  %v2188_v18 = vmov 17  }
   0xc   : > { %1876 = vmatprep.subr.bf16.mxu1 %v2003_v0  ;;  %1984 = vset.pattern.permute.xlu1 %v2187_v2  ;;  %s1806_s25 = sshll.u32 %s3015_s22, 3  ;;  %s1850_s26 = sshll.u32 %s3015_s22, 5  ;;  %vm378_vm1 = vcmask 130048   ;;  %vm864_vm2 = vcmask 154768   ;;  %vm722_vm9 = vcmask 523264  }
   0xd   : > { %1877 = vmatpush3.bf16.msra.mxu1 %v2003_v0  ;;  %1983 = vset.pattern.permute.xlu0 %v2187_v2  ;;  %s2246_s29 = scalar_lea.vmem %s3008_s0, %s1806_s25  ;;  %s2251_s7 = scalar_lea.vmem %s3009_s1, %s1850_s26  ;;  %v2005_v0 = vld [vmem:[%s3011_s3] sm:$0xff]  }
   0xe   : > { %1878 = vmatprep.subr.bf16.mxu1 %v2004_v1  ;;  %v251_v3 = vld [vmem:[%s2246_s29] sm:$0xff]  ;;  %v252_v4 = vld [vmem:[%s2246_s29 + $0x8] sm:$0xff]  ;;  %v253_v5 = vld [vmem:[%s2246_s29 + $0x10] sm:$0xff]  ;;  %s3017_s19 = smov (!%p246_p4, %s2230_s19), 1 }
   0xf   : > { %v288_v6 = vpack.c.bf16 %v252_v4, %v251_v3  ;;  %v254_v7 = vld [vmem:[%s2246_s29 + $0x18] sm:$0xff]  ;;  %v2258_v8 = vld [vmem:[%s2251_s7 + $0x8] sm:$0xff]  ;;  %v2261_v9 = vld [vmem:[%s2251_s7] sm:$0xff]  ;;  %s1810_s17 = sshll.u32 %s3017_s19, 3 }
  0x10   : > { %v289_v10 = vpack.c.bf16 %v254_v7, %v253_v5  ;;  %v1928_v11 = vtrunc.f32 %v2258_v8  ;;  %v1926_v12 = vtrunc.f32 %v2261_v9  ;;  %v2270_v14 = vld [vmem:[%s2251_s7 + $0x10] sm:$0xff]  ;;  %v2275_v17 = vld [vmem:[%s2251_s7 + $0x18] sm:$0xff]  ;;  %v2284_v22 = vld [vmem:[%s2251_s7 + $0x28] sm:$0xff]  ;;  %v362_v7 = vpack.c.bf16 %v2258_v8, %v2261_v9  ;;  %s249_s22 = scalar_lea.vmem %s3013_s5, %s1810_s17 }
  0x11   : > { %1879 = vmatpush3.bf16.msra.mxu1 %v2004_v1  ;;  %1880 = vmatprep.mubr.msk.bf16.mxu1 %vm306_vm0, %v288_v6  ;;  %v1930_v16 = vtrunc.f32 %v2270_v14  ;;  %v1932_v20 = vtrunc.f32 %v2275_v17  ;;  %v1936_v23 = vtrunc.f32 %v2284_v22  ;;  %v2289_v24 = vld [vmem:[%s2251_s7 + $0x20] sm:$0xff]  ;;  %v2294_v27 = vld [vmem:[%s2251_s7 + $0x30] sm:$0xff]  ;;  %v2298_v30 = vld [vmem:[%s2251_s7 + $0x38] sm:$0xff] }
  0x12   : > { %v2267_v13 = vcvt.f32.s32 %v1928_v11  ;;  %v1927_v15 = vcvt.f32.s32 %v1926_v12  ;;  %v1934_v26 = vtrunc.f32 %v2289_v24  ;;  %v1938_v29 = vtrunc.f32 %v2294_v27  ;;  %v2304_v34 = vld [vmem:[%s2251_s7 + $0x48] sm:$0xff]  ;;  %v2309_v36 = vld [vmem:[%s2251_s7 + $0x40] sm:$0xff]  ;;  %v2314_v39 = vld [vmem:[%s2251_s7 + $0x50] sm:$0xff]  ;;  %1884 = vmatprep.subr.bf16.mxu1 %v2005_v0 }
  0x13   : > { %v2278_v19 = vcvt.f32.s32 %v1930_v16  ;;  %v1933_v21 = vcvt.f32.s32 %v1932_v20  ;;  %v1937_v25 = vcvt.f32.s32 %v1936_v23  ;;  %v1940_v32 = vtrunc.f32 %v2298_v30  ;;  %v2323_v50 = vld [vmem:[%s2251_s7 + $0x60] sm:$0xff]  ;;  %v2334_v54 = vld [vmem:[%s2251_s7 + $0x68] sm:$0xff]  ;;  %v2338_v56 = vld [vmem:[%s2251_s7 + $0x70] sm:$0xff] }
  0x14   : > { %1881 = vmatmul.mubr.msk.bf16.vlgmr.msra.gmra.mxu1 %vm306_vm0, %v289_v10  ;;  %526 = vperm.xlu1 %1984, %v2267_v13   ;;  %v1935_v28 = vcvt.f32.s32 %v1934_v26  ;;  %v1939_v31 = vcvt.f32.s32 %v1938_v29  ;;  %v1944_v35 = vtrunc.f32 %v2304_v34  ;;  %v1942_v38 = vtrunc.f32 %v2309_v36  ;;  %v2345_v63 = vld [vmem:[%s2251_s7 + $0x58] sm:$0xff] }
  0x15   : > { %v1941_v33 = vcvt.f32.s32 %v1940_v32  ;;  %v1946_v41 = vtrunc.f32 %v2314_v39  ;;  %v1950_v51 = vtrunc.f32 %v2323_v50  ;;  %v1952_v55 = vtrunc.f32 %v2334_v54  ;;  %1885 = vmatpush3.bf16.msra.mxu1 %v2005_v0  ;;  %1886 = vmatprep.mubr.msk.bf16.mxu1 %vm378_vm1, %v362_v7 }
  0x16   : > { %v1945_v37 = vcvt.f32.s32 %v1944_v35  ;;  %v1943_v40 = vcvt.f32.s32 %v1942_v38  ;;  %v1954_v58 = vtrunc.f32 %v2338_v56  ;;  %v1948_v4 = vtrunc.f32 %v2345_v63 }
  0x17   : > { %v1947_v42 = vcvt.f32.s32 %v1946_v41  ;;  %v2327_v53 = vcvt.f32.s32 %v1950_v51  ;;  %v1953_v57 = vcvt.f32.s32 %v1952_v55  ;;  %v363_v10 = vpack.c.bf16 %v2275_v17, %v2270_v14  ;;  %v2400_v51 = vld [vmem:[%s2251_s7 + $0x78] sm:$0xff] }
  0x18   : > { %1985 = vset.pattern.permute.xlu1 %v2188_v18  ;;  %v2341_v59 = vcvt.f32.s32 %v1954_v58  ;;  %v892_v12 = vsel %vm864_vm2, %v2304_v34, 0.0  ;;  %v879_v16 = vsel %vm864_vm2, %v2284_v22, 0.0  ;;  %v364_v23 = vpack.c.bf16 %v2284_v22, %v2289_v24 }
  0x19   : > { %587 = vperm.xlu1 %1985, %v1927_v15   ;;  %v905_v32 = vsel %vm864_vm2, %v2334_v54, 0.0  ;;  %v520_v55 = vlaneseq }
  0x1c   : > { %1887 = vmatmul.mubr.msk.bf16.vlgmr.msra.gmra.mxu1 %vm378_vm1, %v363_v10  ;;  %v1956_v10 = vtrunc.f32 %v2400_v51 }
  0x1d   : > { %1986 = vset.pattern.permute.xlu1 %v2187_v2  ;;  %1890 = vmatprep.mubr.msk.bf16.mxu1 %vm378_vm1, %v364_v23 }
  0x1e   : > { %529 = vperm.xlu1 %1986, %v2278_v19  }
  0x22   : > { %532 = vperm.xlu1 %1986, %v1933_v21  }
  0x26   : > { %1987 = vset.pattern.permute.xlu1 %v2188_v18 }
  0x27   : > { %596 = vperm.xlu1 %1987, %v1933_v21   ;;  %v894_v21 = vsel %vm864_vm2, %v2314_v39, 0.0 }
  0x2b   : > { %1988 = vset.pattern.permute.xlu1 %v2187_v2 }
  0x2c   : > { %538 = vperm.xlu1 %1988, %v1937_v25  }
  0x30   : > { %1989 = vset.pattern.permute.xlu1 %v2188_v18 }
  0x31   : > { %599 = vperm.xlu1 %1989, %v1935_v28  }
  0x35   : > { %1990 = vset.pattern.permute.xlu1 %v2187_v2 }
  0x36   : > { %541 = vperm.xlu1 %1990, %v1939_v31  }
  0x3a   : > { %544 = vperm.xlu1 %1990, %v1941_v33  }
  0x3e   : > { %1991 = vset.pattern.permute.xlu1 %v2188_v18 }
  0x3f   : > { %608 = vperm.xlu1 %1991, %v1941_v33   ;;  %v896_v33 = vsel %vm864_vm2, %v2345_v63, 0.0 }
  0x43   : > { %1992 = vset.pattern.permute.xlu1 %v2187_v2 }
  0x44   : > { %550 = vperm.xlu1 %1992, %v1945_v37  }
  0x48   : > { %1993 = vset.pattern.permute.xlu1 %v2188_v18 }
  0x49   : > { %611 = vperm.xlu1 %1993, %v1943_v40  }
  0x4d   : > { %1994 = vset.pattern.permute.xlu1 %v2187_v2 }
  0x4e   : > { %553 = vperm.xlu1 %1994, %v1947_v42  }
  0xd4   : > { %v1882_v43 = vpop.f32.mrf.mxu1 }
  0xd6   : > { %v347_v44 = vpop.f32.mrf.mxu1 }
  0xd8   : > { %v1883_v45 = vpop.f32.mrf.mxu1 }
  0xd9   : > { %v1973_v46 = vpack.i.bf16 %v1883_v45, %v1882_v43  ;;  %v517_v52 = vpack.c.bf16 %v1883_v45, %v1882_v43  ;;  %v866_v43 = vsel %vm864_vm2, %v2258_v8, 0.0 }
  0xda   : > { %v350_v47 = vpop.f32.mrf.mxu1 }
  0xdb   : > { %v516_v48 = vpack.c.bf16 %v350_v47, %v347_v44  ;;  %1974 = vrot.lane.b32.xlu0 %v1973_v46, %s2189_s8  ;;  %v1978_v49 = vpack.i.bf16 %v350_v47, %v347_v44  ;;  %v865_v44 = vsel %vm864_vm2, %v2261_v9, 0.0  ;;  %v366_v46 = vpack.c.bf16 %v2304_v34, %v2309_v36 }
  0xdc   : > { %v367_v47 = vpack.c.bf16 %v2345_v63, %v2314_v39 }
  0xdd   : > { %710 = vrot.lane.b32.xlu1 %v516_v48, %s2189_s8 }
  0xdf   : > { %1979 = vrot.lane.b32.xlu0 %v1978_v49, %s2189_s8 }
  0xe3   : > { %523 = vperm.xlu0 %1983, %v1927_v15   ;;  %v1949_v15 = vcvt.f32.s32 %v1948_v4  ;;  %v2412_v4 = vand.u32 127, %v520_v55 }
  0xe7   : > { %535 = vperm.xlu0 %1983, %v1935_v28   ;;  %v881_v28 = vsel %vm864_vm2, %v2294_v27, 0.0 }
  0xeb   : > { %547 = vperm.xlu0 %1983, %v1943_v40   ;;  %v883_v40 = vsel %vm864_vm2, %v2298_v30, 0.0 }
  0xef   : > { %712 = vrot.lane.b32.xlu0 %v517_v52, %s2189_s8  ;;  %v867_v52 = vadd.f32 %v866_v43, %v865_v44 }
  0xf3   : > { %559 = vperm.xlu0 %1983, %v2327_v53  }
  0xf7   : > { %1996 = vset.pattern.permute.xlu0 %v2188_v18 }
  0xf8   : > { %590 = vperm.xlu0 %1996, %v2267_v13   ;;  %v891_v13 = vsel %vm864_vm2, %v2309_v36, 0.0 }
  0xf9   : > { %v893_v20 = vadd.f32 %v892_v12, %v891_v13 }
  0xfb   : > { %v895_v29 = vadd.f32 %v894_v21, %v893_v20  ;;  %v368_v20 = vpack.c.bf16 %v2334_v54, %v2323_v50  ;;  %v369_v21 = vpack.c.bf16 %v2400_v51, %v2338_v56 }
  0xfc   : > { %593 = vperm.xlu0 %1996, %v2278_v19   ;;  %v878_v19 = vsel %vm864_vm2, %v2289_v24, 0.0 }
  0xfd   : > { %v880_v26 = vadd.f32 %v879_v16, %v878_v19  ;;  %v897_v41 = vadd.f32 %v896_v33, %v895_v29 }
  0xff   : > { %v898_v58 = vrot.slane %v897_v41, 4 }
 0x100   : > { %602 = vperm.xlu0 %1996, %v1937_v25   ;;  %v365_v25 = vpack.c.bf16 %v2298_v30, %v2294_v27 }
 0x102   : > { %1891 = vmatmul.mubr.msk.bf16.gmra.mxu1 %vm378_vm1, %v365_v25 }
 0x103   : > { %1894 = vmatprep.mubr.msk.bf16.mxu1 %vm378_vm1, %v366_v46 }
 0x104   : > { %605 = vperm.xlu0 %1996, %v1939_v31   ;;  %v904_v31 = vsel %vm864_vm2, %v2323_v50, 0.0 }
 0x105   : > { %v906_v38 = vadd.f32 %v905_v32, %v904_v31  ;;  %v2190_v31 = vmov 0.0  }
 0x108   : > { %614 = vperm.xlu0 %1996, %v1945_v37   ;;  %v882_v37 = vadd.f32 %v881_v28, %v880_v26 }
 0x10a   : > { %v884_v48 = vadd.f32 %v883_v40, %v882_v37  ;;  %1895 = vmatmul.mubr.msk.bf16.gmra.mxu1 %vm378_vm1, %v367_v47 }
 0x10b   : > { %1898 = vmatprep.mubr.msk.bf16.mxu1 %vm378_vm1, %v368_v20 }
 0x10c   : > { %617 = vperm.xlu0 %1996, %v1947_v42   ;;  %v907_v42 = vsel %vm864_vm2, %v2338_v56, 0.0 }
 0x10d   : > { %v908_v49 = vadd.f32 %v907_v42, %v906_v38  ;;  %v2191_v42 = vmov 18  }
 0x110   : > { %626 = vperm.xlu0 %1996, %v1953_v57  }
 0x112   : > { %1899 = vmatmul.mubr.msk.bf16.gmra.mxu1 %vm378_vm1, %v369_v21 }
 0x114   : > { %629 = vperm.xlu0 %1996, %v2341_v59  }
 0x118   : > { %2001 = vset.pattern.permute.xlu0 %v2191_v42 }
 0x119   : > { %947 = vperm.xlu0 %2001, %v2289_v24  }
 0x11d   : > { %972 = vperm.xlu0 %2001, %v2304_v34  }
 0x121   : > { %987 = vperm.xlu0 %2001, %v2323_v50  }
 0x125   : > { %977 = vperm.xlu0 %2001, %v2314_v39  }
 0x129   : > { %997 = vperm.xlu0 %2001, %v2338_v56  }
 0x12d   : > { %1002 = vperm.xlu0 %2001, %v2400_v51  }
 0x14d   : > { %v1975_v60 = vpop.permute.xlu0 %1974 }
 0x14e   : > { %v1977_v61 = vunpack.i.h.bf16 %v1975_v60  ;;  %v1976_v62 = vunpack.i.l.bf16 %v1975_v60  ;;  %v909_v60 = vsel %vm864_vm2, %v2400_v51, 0.0 }
 0x150   : > { %v519_v1 = vpack.c.bf16 %v1977_v61, %v1976_v62  ;;  %v868_v61 = vsel %vm864_vm2, %v2270_v14, 0.0  ;;  %v527_v62 = vpop.permute.xlu1 %526 }
 0x151   : > { %v1980_v3 = vpop.permute.xlu0 %1979  ;;  %vm571_vm6 = vcmp.eq.s32.totalorder %v2412_v4, %v527_v62 }
 0x152   : > { %v1982_v5 = vunpack.i.h.bf16 %v1980_v3  ;;  %v1981_v6 = vunpack.i.l.bf16 %v1980_v3  ;;  %716 = vrot.lane.b32.xlu1 %v519_v1, %s2189_s8  ;;  %v885_v1 = vrot.slane %v884_v48, 4  ;;  %v869_v3 = vadd.f32 %v868_v61, %v867_v52 }
 0x154   : > { %v518_v11 = vpack.c.bf16 %v1982_v5, %v1981_v6  ;;  %v899_v5 = vadd.f32 %v898_v58, %v897_v41  ;;  %v870_v6 = vsel %vm864_vm2, %v2275_v17, 0.0  ;;  %v588_v12 = vpop.permute.xlu1 %587 }
 0x155   : > { %vm634_vm3 = vcmp.eq.s32.totalorder %v2412_v4, %v588_v12 }
 0x156   : > { %714 = vrot.lane.b32.xlu1 %v518_v11, %s2189_s8  ;;  %v886_v11 = vadd.f32 %v885_v1, %v884_v48  ;;  %v900_v16 = vrot.slane %v899_v5, 2 }
 0x158   : > { %v887_v23 = vrot.slane %v886_v11, 2  ;;  %v2440_v48 = vpop.permute.xlu1 %529 }
 0x159   : > { %vm572_vm14 = vcmp.eq.s32.totalorder %v2412_v4, %v2440_v48 }
 0x15a   : > { %556 = vperm.xlu1 %1994, %v1949_v15   ;;  %v888_v28 = vadd.f32 %v887_v23, %v886_v11 }
 0x15c   : > { %v889_v40 = vrot.slane %v888_v28, 1  ;;  %v533_v24 = vpop.permute.xlu1 %532 }
 0x15d   : > { %vm573_vm10 = vcmp.eq.s32.totalorder %v2412_v4, %v533_v24  ;;  %v1888_v24 = vpop.f32.mrf.mxu1 }
 0x15e   : > { %v524_v35 = vpop.permute.xlu0 %523  ;;  %1995 = vset.pattern.permute.xlu1 %v2188_v18  ;;  %v890_v46 = vadd.f32 %v889_v40, %v888_v28 }
 0x15f   : > { %620 = vperm.xlu1 %1995, %v1949_v15   ;;  %v871_v15 = vadd.f32 %v870_v6, %v869_v3  ;;  %vm570_vm4 = vcmp.eq.s32.totalorder %v2412_v4, %v524_v35 }
 0x160   : > { %vm650_vm5 = vmor %vm570_vm4, %vm634_vm3  ;;  %v918_v52 = vmax.f32 %v890_v46, 1.0  ;;  %v597_v62 = vpop.permute.xlu1 %596 }
 0x161   : > { %v1824_v32 = vsel %vm650_vm5, 1.0, %v2190_v31  ;;  %vm637_vm11 = vcmp.eq.s32.totalorder %v2412_v4, %v597_v62 }
 0x162   : > { %v2392_v45 = vpop.permute.xlu0 %535  ;;  %vm653_vm1 = vmor %vm573_vm10, %vm637_vm11 }
 0x163   : > { %1997 = vset.pattern.permute.xlu1 %v2187_v2  ;;  %vm574_vm13 = vcmp.eq.s32.totalorder %v2412_v4, %v2392_v45 }
 0x164   : > { %562 = vperm.xlu1 %1997, %v1953_v57   ;;  %v910_v57 = vadd.f32 %v909_v60, %v908_v49  ;;  %v539_v50 = vpop.permute.xlu1 %538 }
 0x165   : > { %vm575_vm2 = vcmp.eq.s32.totalorder %v2412_v4, %v539_v50 }
 0x166   : > { %v2408_v0 = vpop.permute.xlu0 %547  ;;  %v911_v13 = vrot.slane %v910_v57, 4 }
 0x167   : > { %vm578_vm11 = vcmp.eq.s32.totalorder %v2412_v4, %v2408_v0 }
 0x168   : > { %1998 = vset.pattern.permute.xlu1 %v2188_v18  ;;  %v912_v25 = vadd.f32 %v911_v13, %v910_v57  ;;  %v600_v1 = vpop.permute.xlu1 %599 }
 0x169   : > { %623 = vperm.xlu1 %1998, %v2327_v53   ;;  %v1957_v53 = vcvt.f32.s32 %v1956_v10  ;;  %vm638_vm12 = vcmp.eq.s32.totalorder %v2412_v4, %v600_v1 }
 0x16a   : > { %v2417_v7 = vpop.permute.xlu0 %712  ;;  %v913_v29 = vrot.slane %v912_v25, 2  ;;  %vm654_vm4 = vmor %vm574_vm13, %vm638_vm12 }
 0x16b   : > { %v1828_v12 = vsel %vm654_vm4, 1.0, %v2190_v31 }
 0x16c   : > { %v914_v41 = vadd.f32 %v913_v29, %v912_v25  ;;  %v542_v56 = vpop.permute.xlu1 %541 }
 0x16d   : > { %1999 = vset.pattern.permute.xlu1 %v2187_v2  ;;  %v872_v2 = vrot.slane %v871_v15, 4  ;;  %vm576_vm12 = vcmp.eq.s32.totalorder %v2412_v4, %v542_v56  ;;  %v2543_v56 = vshrl.u32 %v520_v55, 7 }
 0x16e   : > { %565 = vperm.xlu1 %1999, %v2341_v59   ;;  %v2424_v19 = vpop.permute.xlu0 %559  ;;  %v901_v59 = vadd.f32 %v900_v16, %v899_v5  ;;  %v915_v47 = vrot.slane %v914_v41, 1 }
 0x16f   : > { %v873_v33 = vadd.f32 %v872_v2, %v871_v15 }
 0x170   : > { %v902_v35 = vrot.slane %v901_v59, 1  ;;  %v916_v58 = vadd.f32 %v915_v47, %v914_v41 }
 0x171   : > { %v874_v43 = vrot.slane %v873_v33, 2 }
 0x172   : > { %568 = vperm.xlu1 %1999, %v1957_v53   ;;  %v903_v44 = vadd.f32 %v902_v35, %v901_v59  ;;  %v920_v61 = vmax.f32 %v916_v58, 1.0 }
 0x173   : > { %v591_v26 = vpop.permute.xlu0 %590 }
 0x174   : > { %vm635_vm7 = vcmp.eq.s32.totalorder %v2412_v4, %v591_v26  ;;  %v919_v49 = vmax.f32 %v903_v44, 1.0 }
 0x175   : > { %vm651_vm8 = vmor %vm571_vm6, %vm635_vm7 }
 0x176   : > { %2000 = vset.pattern.permute.xlu1 %v2188_v18  ;;  %v1825_v37 = vsel %vm651_vm8, 1.0, %v2190_v31  ;;  %v875_v18 = vadd.f32 %v874_v43, %v873_v33  ;;  %2006 = vrcp.f32 %v919_v49 }
 0x177   : > { %632 = vperm.xlu1 %2000, %v1957_v53   ;;  %v698_v38 = vpack.c.bf16 %v1825_v37, %v1824_v32  ;;  %2008 = vrcp.f32 %v918_v52  ;;  %v594_v6 = vpop.permute.xlu0 %593 }
 0x178   : > { %v876_v60 = vrot.slane %v875_v18, 1  ;;  %2010 = vrcp.f32 %v920_v61  ;;  %vm636_vm15 = vcmp.eq.s32.totalorder %v2412_v4, %v594_v6 }
 0x179   : > { %1910 = vmatprep.mubr.msk.bf16.mxu0 %vm722_vm9, %v698_v38  ;;  %vm652_vm5 = vmor %vm572_vm14, %vm636_vm15 }
 0x17a   : > { %v1826_v45 = vsel %vm652_vm5, 1.0, %v2190_v31 }
 0x17b   : > { %2002 = vset.pattern.permute.xlu1 %v2191_v42 }
 0x17c   : > { %952 = vperm.xlu1 %2002, %v2284_v22   ;;  %v877_v22 = vadd.f32 %v876_v60, %v875_v18 }
 0x17e   : > { %v917_v34 = vmax.f32 %v877_v22, 1.0  ;;  %v437_v22 = vpop.f32.mrf.mxu1 }
 0x180   : > { %967 = vperm.xlu1 %2002, %v2309_v36   ;;  %2012 = vrcp.f32 %v917_v34  ;;  %v1889_v62 = vpop.f32.mrf.mxu1 }
 0x182   : > { %v440_v50 = vpop.f32.mrf.mxu1 }
 0x183   : > { %v2007_v36 = vpop.eup %2006 }
 0x184   : > { %957 = vperm.xlu1 %2002, %v2294_v27   ;;  %v2009_v27 = vpop.eup %2008  ;;  %1085 = vperm.xlu0 %2001, %v2007_v36  }
 0x185   : > { %v2011_v39 = vpop.eup %2010 }
 0x188   : > { %992 = vperm.xlu1 %2002, %v2334_v54   ;;  %927 = vperm.xlu0 %2001, %v2261_v9   ;;  %v603_v9 = vpop.permute.xlu0 %602 }
 0x189   : > { %vm639_vm3 = vcmp.eq.s32.totalorder %v2412_v4, %v603_v9 }
 0x18a   : > { %vm655_vm6 = vmor %vm575_vm2, %vm639_vm3 }
 0x18b   : > { %v1829_v13 = vsel %vm655_vm6, 1.0, %v2190_v31 }
 0x18c   : > { %962 = vperm.xlu1 %2002, %v2298_v30   ;;  %937 = vperm.xlu0 %2001, %v2270_v14   ;;  %v545_v30 = vpop.permute.xlu1 %544  ;;  %v606_v14 = vpop.permute.xlu0 %605  ;;  %v700_v15 = vpack.c.bf16 %v1829_v13, %v1828_v12 }
 0x18d   : > { %v2013_v54 = vpop.eup %2012  ;;  %vm577_vm7 = vcmp.eq.s32.totalorder %v2412_v4, %v545_v30  ;;  %vm640_vm13 = vcmp.eq.s32.totalorder %v2412_v4, %v606_v14 }
 0x18e   : > { %vm656_vm3 = vmor %vm576_vm12, %vm640_vm13 }
 0x18f   : > { %v1830_v53 = vsel %vm656_vm3, 1.0, %v2190_v31 }
 0x190   : > { %982 = vperm.xlu1 %2002, %v2345_v63   ;;  %1075 = vperm.xlu0 %2001, %v2013_v54   ;;  %v609_v51 = vpop.permute.xlu1 %608  ;;  %v615_v11 = vpop.permute.xlu0 %614 }
 0x191   : > { %vm641_vm8 = vcmp.eq.s32.totalorder %v2412_v4, %v609_v51 }
 0x192   : > { %vm657_vm14 = vmor %vm577_vm7, %vm641_vm8 }
 0x193   : > { %v1831_v0 = vsel %vm657_vm14, 1.0, %v2190_v31 }
 0x194   : > { %1080 = vperm.xlu1 %2002, %v2009_v27   ;;  %v551_v63 = vpop.permute.xlu1 %550  ;;  %v618_v23 = vpop.permute.xlu0 %617  ;;  %v701_v2 = vpack.c.bf16 %v1831_v0, %v1830_v53 }
 0x195   : > { %vm579_vm15 = vcmp.eq.s32.totalorder %v2412_v4, %v551_v63  ;;  %vm644_vm7 = vcmp.eq.s32.totalorder %v2412_v4, %v618_v23  ;;  %v846_v63 = vsub.s32 0, %v2543_v56 }
 0x198   : > { %1090 = vperm.xlu1 %2002, %v2011_v39   ;;  %v612_v57 = vpop.permute.xlu1 %611  ;;  %v627_v32 = vpop.permute.xlu0 %626 }
 0x199   : > { %vm642_vm10 = vcmp.eq.s32.totalorder %v2412_v4, %v612_v57  ;;  %vm647_vm13 = vcmp.eq.s32.totalorder %v2412_v4, %v627_v32 }
 0x19a   : > { %vm658_vm2 = vmor %vm578_vm11, %vm642_vm10 }
 0x19b   : > { %v1832_v20 = vsel %vm658_vm2, 1.0, %v2190_v31 }
 0x19c   : > { %932 = vperm.xlu1 %2002, %v2258_v8   ;;  %v2456_v3 = vpop.permute.xlu1 %553  ;;  %v630_v43 = vpop.permute.xlu0 %629 }
 0x19d   : > { %vm580_vm6 = vcmp.eq.s32.totalorder %v2412_v4, %v2456_v3  ;;  %v2551_v3 = vld [vmem:[%s3012_s4] sm:$0x1f] }
 0x19e   : > { %vm660_vm11 = vmor %vm580_vm6, %vm644_vm7 }
 0x19f   : > { %v1834_v29 = vsel %vm660_vm11, 1.0, %v2190_v31 }
 0x1a0   : > { %942 = vperm.xlu1 %2002, %v2275_v17   ;;  %v711_v5 = vpop.permute.xlu1 %710  ;;  %v1827_v17 = vsel %vm653_vm1, 1.0, %v2190_v31  ;;  %vm643_vm1 = vcmp.eq.s32.totalorder %v2412_v4, %v615_v11  ;;  %v2516_v48 = vpop.permute.xlu0 %947 }
 0x1a1   : > { %vm659_vm4 = vmor %vm579_vm15, %vm643_vm1  ;;  %vm582_vm15 = vcmp.eq.s32.totalorder %v2412_v4, %v2424_v19 }
 0x1a2   : > { %v1833_v21 = vsel %vm659_vm4, 1.0, %v2190_v31  ;;  %vm648_vm4 = vcmp.eq.s32.totalorder %v2412_v4, %v630_v43 }
 0x1a3   : > { %v702_v59 = vpack.c.bf16 %v1833_v21, %v1832_v20 }
 0x1a4   : > { %v2520_v52 = vpop.permute.xlu0 %972 }
 0x1a8   : > { %v2524_v60 = vpop.permute.xlu0 %987 }
 0x1ac   : > { %v2528_v61 = vpop.permute.xlu0 %977 }
 0x1b0   : > { %v2532_v34 = vpop.permute.xlu0 %997 }
 0x1b4   : > { %v2536_v27 = vpop.permute.xlu0 %1002 }
 0x1c2   : > { %v1892_v1 = vpop.f32.mrf.mxu1 }
 0x1c4   : > { %v717_v10 = vpop.permute.xlu1 %716  ;;  %v453_v30 = vpop.f32.mrf.mxu1 }
 0x1c5   : > { %1902 = vmatprep.subr.bf16.mxu0 %v717_v10 }
 0x1c6   : > { %1903 = vmatpush3.bf16.msra.mxu0 %v717_v10 }
 0x1c8   : > { %v715_v8 = vpop.permute.xlu1 %714 }
 0x1c9   : > { %1904 = vmatprep.subr.bf16.mxu0 %v715_v8 }
 0x1ca   : > { %1905 = vmatpush3.bf16.msra.mxu0 %v715_v8  ;;  %v2556_v8 = vrot.slane %v2551_v3, %v846_v63 }
 0x1cb   : > { %1906 = vmatprep.subr.bf16.mxu0 %v2417_v7 }
 0x1ce   : > { %1907 = vmatpush3.bf16.msra.mxu0 %v2417_v7  ;;  %v699_v7 = vpack.c.bf16 %v1827_v17, %v1826_v45 }
 0x1cf   : > { %1908 = vmatprep.subr.bf16.mxu0 %v711_v5 }
 0x1d2   : > { %1909 = vmatpush3.bf16.msra.mxu0 %v711_v5  ;;  %v1893_v5 = vpop.f32.mrf.mxu1 }
 0x1d4   : > { %v456_v45 = vpop.f32.mrf.mxu1 }
 0x1d5   : > { %1911 = vmatmul.mubr.msk.bf16.vlgmr.msra.gmra.mxu0 %vm722_vm9, %v699_v7  ;;  %v557_v16 = vpop.permute.xlu1 %556 }
 0x1d6   : > { %1914 = vmatprep.mubr.msk.bf16.mxu0 %vm722_vm9, %v700_v15  ;;  %vm581_vm8 = vcmp.eq.s32.totalorder %v2412_v4, %v557_v16  ;;  %v1896_v20 = vpop.f32.mrf.mxu1 }
 0x1da   : > { %v621_v25 = vpop.permute.xlu1 %620 }
 0x1db   : > { %vm645_vm5 = vcmp.eq.s32.totalorder %v2412_v4, %v621_v25 }
 0x1dc   : > { %vm661_vm10 = vmor %vm581_vm8, %vm645_vm5 }
 0x1dd   : > { %1915 = vmatmul.mubr.msk.bf16.gmra.mxu0 %vm722_vm9, %v701_v2  ;;  %v1835_v28 = vsel %vm661_vm10, 1.0, %v2190_v31 }
 0x1de   : > { %1918 = vmatprep.mubr.msk.bf16.mxu0 %vm722_vm9, %v702_v59  ;;  %v703_v33 = vpack.c.bf16 %v1835_v28, %v1834_v29 }
 0x1df   : > { %v563_v26 = vpop.permute.xlu1 %562 }
 0x1e0   : > { %vm583_vm12 = vcmp.eq.s32.totalorder %v2412_v4, %v563_v26 }
 0x1e1   : > { %vm663_vm14 = vmor %vm583_vm12, %vm647_vm13 }
 0x1e2   : > { %v1837_v37 = vsel %vm663_vm14, 1.0, %v2190_v31 }
 0x1e4   : > { %v624_v35 = vpop.permute.xlu1 %623 }
 0x1e5   : > { %vm646_vm1 = vcmp.eq.s32.totalorder %v2412_v4, %v624_v35  ;;  %1919 = vmatmul.mubr.msk.bf16.gmra.mxu0 %vm722_vm9, %v703_v33  ;;  %v469_v35 = vpop.f32.mrf.mxu1 }
 0x1e6   : > { %vm662_vm2 = vmor %vm582_vm15, %vm646_vm1 }
 0x1e7   : > { %v1836_v38 = vsel %vm662_vm2, 1.0, %v2190_v31 }
 0x1e8   : > { %v704_v40 = vpack.c.bf16 %v1837_v37, %v1836_v38 }
 0x1e9   : > { %v566_v41 = vpop.permute.xlu1 %565 }
 0x1ea   : > { %1922 = vmatprep.mubr.msk.bf16.mxu0 %vm722_vm9, %v704_v40  ;;  %vm584_vm3 = vcmp.eq.s32.totalorder %v2412_v4, %v566_v41 }
 0x1eb   : > { %vm664_vm5 = vmor %vm584_vm3, %vm648_vm4 }
 0x1ec   : > { %v1838_v44 = vsel %vm664_vm5, 1.0, %v2190_v31 }
 0x1ed   : > { %v569_v42 = vpop.permute.xlu1 %568 }
 0x1ee   : > { %vm585_vm6 = vcmp.eq.s32.totalorder %v2412_v4, %v569_v42 }
 0x1f2   : > { %v633_v19 = vpop.permute.xlu1 %632 }
 0x1f3   : > { %vm649_vm7 = vcmp.eq.s32.totalorder %v2412_v4, %v633_v19 }
 0x1f4   : > { %vm665_vm8 = vmor %vm585_vm6, %vm649_vm7 }
 0x1f5   : > { %v1839_v46 = vsel %vm665_vm8, 1.0, %v2190_v31 }
 0x1f6   : > { %v705_v47 = vpack.c.bf16 %v1839_v46, %v1838_v44 }
 0x1f7   : > { %v2514_v18 = vpop.permute.xlu1 %952 }
 0x1f8   : > { %1923 = vmatmul.mubr.msk.bf16.gmra.mxu0 %vm722_vm9, %v705_v47 }
 0x1fb   : > { %v2518_v49 = vpop.permute.xlu1 %967 }
 0x1ff   : > { %v2522_v58 = vpop.permute.xlu1 %957  ;;  %v2540_v54 = vpop.permute.xlu0 %1085 }
 0x203   : > { %v2526_v4 = vpop.permute.xlu1 %992  ;;  %v2553_v6 = vpop.permute.xlu0 %927 }
 0x207   : > { %v2530_v31 = vpop.permute.xlu1 %962  ;;  %v2566_v15 = vpop.permute.xlu0 %937 }
 0x20b   : > { %v2534_v36 = vpop.permute.xlu1 %982 }
 0x20f   : > { %v2538_v39 = vpop.permute.xlu1 %1080 }
 0x213   : > { %v2545_v51 = vpop.permute.xlu1 %1090 }
 0x217   : > { %v2558_v14 = vpop.permute.xlu1 %932 }
 0x21b   : > { %v2576_v25 = vpop.permute.xlu1 %942 }
 0x295   : > { %v1912_v57 = vpop.f32.mrf.mxu0 }
 0x296   : > { %v790_v9 = vadd.f32 %v1912_v57, %v1888_v24 }
 0x297   : > { %v781_v10 = vpop.f32.mrf.mxu0 }
 0x298   : > { %v782_v55 = vadd.f32 %v781_v10, %v437_v22  ;;  %v2564_v7 = vadd.f32 %v2556_v8, %v790_v9 }
 0x299   : > { %v1913_v17 = vpop.f32.mrf.mxu0 }
 0x29a   : > { %v2561_v11 = vadd.f32 %v2556_v8, %v782_v55  ;;  %v793_v12 = vadd.f32 %v1913_v17, %v1889_v62  ;;  %v1007_v59 = vmul.f32 %v2566_v15, %v2564_v7  ;;  %v1897_v62 = vpop.f32.mrf.mxu1 }
 0x29b   : > { %v784_v13 = vpop.f32.mrf.mxu0 }
 0x29c   : > { %v785_v16 = vadd.f32 %v784_v13, %v440_v50  ;;  %v1005_v0 = vmul.f32 %v2553_v6, %v2561_v11  ;;  %v2571_v21 = vadd.f32 %v2556_v8, %v793_v12  ;;  %v1024_v19 = vsel %vm722_vm9, %v1007_v59, 0.0  ;;  %v472_v13 = vpop.f32.mrf.mxu1 }
 0x29d   : > { %v1916_v53 = vpop.f32.mrf.mxu0 }
 0x29e   : > { %v2574_v23 = vadd.f32 %v2556_v8, %v785_v16  ;;  %v806_v28 = vadd.f32 %v1916_v53, %v1892_v1  ;;  %v1021_v32 = vsel %vm722_vm9, %v1005_v0, 0.0  ;;  %v1008_v38 = vmul.f32 %v2576_v25, %v2571_v21 }
 0x29f   : > { %v797_v2 = vpop.f32.mrf.mxu0 }
 0x2a0   : > { %v1006_v26 = vmul.f32 %v2558_v14, %v2574_v23  ;;  %v798_v29 = vadd.f32 %v797_v2, %v453_v30  ;;  %v2591_v44 = vadd.f32 %v2556_v8, %v806_v28  ;;  %v1026_v50 = vsel %vm722_vm9, %v1008_v38, 0.0 }
 0x2a1   : > { %v1917_v33 = vpop.f32.mrf.mxu0 }
 0x2a2   : > { %v1022_v37 = vsel %vm722_vm9, %v1006_v26, 0.0  ;;  %v2587_v40 = vadd.f32 %v2556_v8, %v798_v29  ;;  %v809_v41 = vadd.f32 %v1917_v33, %v1893_v5  ;;  %v1011_v5 = vmul.f32 %v2522_v58, %v2591_v44 }
 0x2a3   : > { %v1023_v42 = vadd.f32 %v1022_v37, %v1021_v32  ;;  %v800_v43 = vpop.f32.mrf.mxu0 }
 0x2a4   : > { %v801_v46 = vadd.f32 %v800_v43, %v456_v45  ;;  %v1009_v24 = vmul.f32 %v2516_v48, %v2587_v40  ;;  %v2597_v1 = vadd.f32 %v2556_v8, %v809_v41 }
 0x2a5   : > { %v1025_v47 = vadd.f32 %v1024_v19, %v1023_v42  ;;  %v1920_v22 = vpop.f32.mrf.mxu0 }
 0x2a6   : > { %v2600_v30 = vadd.f32 %v2556_v8, %v801_v46  ;;  %v822_v9 = vadd.f32 %v1920_v22, %v1896_v20  ;;  %v1034_v45 = vsel %vm722_vm9, %v1009_v24, 0.0  ;;  %v1012_v16 = vmul.f32 %v2530_v31, %v2597_v1 }
 0x2a7   : > { %v1027_v63 = vadd.f32 %v1026_v50, %v1025_v47  ;;  %v813_v57 = vpop.f32.mrf.mxu0  ;;  %v1037_v20 = vsel %vm722_vm9, %v1011_v5, 0.0 }
 0x2a8   : > { %v1010_v10 = vmul.f32 %v2514_v18, %v2600_v30  ;;  %v814_v55 = vadd.f32 %v813_v57, %v469_v35  ;;  %v2615_v29 = vadd.f32 %v2556_v8, %v822_v9  ;;  %v1039_v37 = vsel %vm722_vm9, %v1012_v16, 0.0 }
 0x2a9   : > { %v1028_v17 = vrot.slane %v1027_v63, 4  ;;  %v1921_v12 = vpop.f32.mrf.mxu0 }
 0x2aa   : > { %v1035_v0 = vsel %vm722_vm9, %v1010_v10, 0.0  ;;  %v2611_v53 = vadd.f32 %v2556_v8, %v814_v55  ;;  %v825_v2 = vadd.f32 %v1921_v12, %v1897_v62  ;;  %v1015_v46 = vmul.f32 %v2528_v61, %v2615_v29  ;;  %v2635_v55 = vpop.permute.xlu0 %1075 }
 0x2ab   : > { %v1036_v59 = vadd.f32 %v1035_v0, %v1034_v45  ;;  %v816_v26 = vpop.f32.mrf.mxu0  ;;  %v1029_v28 = vadd.f32 %v1028_v17, %v1027_v63 }
 0x2ac   : > { %v817_v32 = vadd.f32 %v816_v26, %v472_v13  ;;  %v1013_v38 = vmul.f32 %v2518_v49, %v2611_v53  ;;  %v2621_v41 = vadd.f32 %v2556_v8, %v825_v2  ;;  %v1050_v9 = vsel %vm722_vm9, %v1015_v46, 0.0 }
 0x2ad   : > { %v1038_v33 = vadd.f32 %v1037_v20, %v1036_v59  ;;  %v1030_v35 = vrot.slane %v1029_v28, 2 }
 0x2ae   : > { %v2624_v42 = vadd.f32 %v2556_v8, %v817_v32  ;;  %v1047_v62 = vsel %vm722_vm9, %v1013_v38, 0.0  ;;  %v1016_v50 = vmul.f32 %v2534_v36, %v2621_v41 }
 0x2af   : > { %v1040_v43 = vadd.f32 %v1039_v37, %v1038_v33  ;;  %v1031_v19 = vadd.f32 %v1030_v35, %v1029_v28  ;;  %v1900_v35 = vpop.f32.mrf.mxu1 }
 0x2b0   : > { %v1014_v47 = vmul.f32 %v2520_v52, %v2624_v42  ;;  %v1052_v13 = vsel %vm722_vm9, %v1016_v50, 0.0 }
 0x2b1   : > { %v1041_v24 = vrot.slane %v1040_v43, 4  ;;  %v1032_v22 = vrot.slane %v1031_v19, 1 }
 0x2b2   : > { %v1048_v63 = vsel %vm722_vm9, %v1014_v47, 0.0 }
 0x2b3   : > { %v1042_v57 = vadd.f32 %v1041_v24, %v1040_v43  ;;  %v1049_v5 = vadd.f32 %v1048_v63, %v1047_v62  ;;  %v1033_v10 = vadd.f32 %v1032_v22, %v1031_v19  ;;  %v485_v22 = vpop.f32.mrf.mxu1 }
 0x2b5   : > { %v1043_v17 = vrot.slane %v1042_v57, 2  ;;  %v1051_v45 = vadd.f32 %v1050_v9, %v1049_v5  ;;  %v1093_v12 = vmul.f32 %v2635_v55, %v1033_v10 }
 0x2b7   : > { %v1044_v16 = vadd.f32 %v1043_v17, %v1042_v57  ;;  %v1053_v0 = vadd.f32 %v1052_v13, %v1051_v45  ;;  %v2640_v2 = vsub.f32 %v2561_v11, %v1093_v12  ;;  %v2643_v59 = vsub.f32 %v2574_v23, %v1093_v12 }
 0x2b8   : > { %v1924_v26 = vpop.f32.mrf.mxu0  ;;  %v2650_v37 = vsub.f32 %v2564_v7, %v1093_v12  ;;  %v2655_v46 = vsub.f32 %v2571_v21, %v1093_v12 }
 0x2b9   : > { %v1045_v28 = vrot.slane %v1044_v16, 1  ;;  %v1054_v20 = vrot.slane %v1053_v0, 4  ;;  %v1113_v32 = vmul.f32 %v2640_v2, %v2640_v2  ;;  %v1114_v33 = vmul.f32 %v2643_v59, %v2643_v59 }
 0x2ba   : > { %v829_v19 = vpop.f32.mrf.mxu0  ;;  %v1115_v62 = vmul.f32 %v2650_v37, %v2650_v37  ;;  %v1116_v17 = vmul.f32 %v2655_v46, %v2655_v46 }
 0x2bb   : > { %v1046_v38 = vadd.f32 %v1045_v28, %v1044_v16  ;;  %v1055_v43 = vadd.f32 %v1054_v20, %v1053_v0  ;;  %v1129_v11 = vmul.f32 %v1113_v32, %v2553_v6  ;;  %v1130_v23 = vmul.f32 %v1114_v33, %v2558_v14  ;;  %v1901_v0 = vpop.f32.mrf.mxu1 }
 0x2bc   : > { %v830_v63 = vadd.f32 %v829_v19, %v485_v22  ;;  %v1925_v45 = vpop.f32.mrf.mxu0  ;;  %v838_v28 = vadd.f32 %v1924_v26, %v1900_v35 }
 0x2bd   : > { %v1094_v47 = vmul.f32 %v2538_v39, %v1046_v38  ;;  %v1056_v24 = vrot.slane %v1055_v43, 2  ;;  %v1145_v7 = vsel %vm722_vm9, %v1129_v11, 0.0  ;;  %v1146_v50 = vsel %vm722_vm9, %v1130_v23, 0.0 }
 0x2be   : > { %v1147_v16 = vadd.f32 %v1146_v50, %v1145_v7  ;;  %v2689_v38 = vadd.f32 %v2556_v8, %v830_v63  ;;  %v1132_v11 = vmul.f32 %v1116_v17, %v2576_v25  ;;  %v832_v23 = vpop.f32.mrf.mxu0  ;;  %v841_v26 = vadd.f32 %v1925_v45, %v1901_v0  ;;  %v488_v7 = vpop.f32.mrf.mxu1 }
 0x2bf   : > { %v2663_v57 = vsub.f32 %v2587_v40, %v1094_v47  ;;  %v2666_v5 = vsub.f32 %v2600_v30, %v1094_v47  ;;  %v2669_v21 = vsub.f32 %v2591_v44, %v1094_v47  ;;  %v2672_v10 = vsub.f32 %v2597_v1, %v1094_v47 }
 0x2c0   : > { %v1057_v9 = vadd.f32 %v1056_v24, %v1055_v43  ;;  %v1131_v1 = vmul.f32 %v1115_v62, %v2566_v15  ;;  %v2698_v50 = vadd.f32 %v2556_v8, %v838_v28  ;;  %v1017_v17 = vmul.f32 %v2524_v60, %v2689_v38 }
 0x2c1   : > { %v1117_v12 = vmul.f32 %v2663_v57, %v2663_v57  ;;  %v1118_v40 = vmul.f32 %v2666_v5, %v2666_v5  ;;  %v1119_v30 = vmul.f32 %v2669_v21, %v2669_v21  ;;  %v1120_v44 = vmul.f32 %v2672_v10, %v2672_v10 }
 0x2c2   : > { %v1058_v13 = vrot.slane %v1057_v9, 1  ;;  %v1148_v62 = vsel %vm722_vm9, %v1131_v1, 0.0 }
 0x2c3   : > { %v1133_v20 = vmul.f32 %v1117_v12, %v2516_v48  ;;  %v1134_v32 = vmul.f32 %v1118_v40, %v2514_v18  ;;  %v1135_v33 = vmul.f32 %v1119_v30, %v2522_v58  ;;  %v1136_v19 = vmul.f32 %v1120_v44, %v2530_v31 }
 0x2c4   : > { %v1059_v43 = vadd.f32 %v1058_v13, %v1057_v9  ;;  %v1149_v9 = vadd.f32 %v1148_v62, %v1147_v16  ;;  %v833_v12 = vadd.f32 %v832_v23, %v488_v7  ;;  %v2717_v16 = vadd.f32 %v2556_v8, %v841_v26 }
 0x2c5   : > { %v1158_v47 = vsel %vm722_vm9, %v1133_v20, 0.0  ;;  %v1159_v24 = vsel %vm722_vm9, %v1134_v32, 0.0  ;;  %v1161_v63 = vsel %vm722_vm9, %v1135_v33, 0.0  ;;  %v1163_v13 = vsel %vm722_vm9, %v1136_v19, 0.0 }
 0x2c6   : > { %v1160_v35 = vadd.f32 %v1159_v24, %v1158_v47  ;;  %v1095_v22 = vmul.f32 %v2540_v54, %v1059_v43  ;;  %v861_v0 = vadd.f32 %v2556_v8, %v833_v12  ;;  %v1019_v32 = vmul.f32 %v2532_v34, %v2698_v50 }
 0x2c7   : > { %v1060_v24 = vsel %vm722_vm9, %v1017_v17, 0.0  ;;  %v1020_v26 = vmul.f32 %v2536_v27, %v2717_v16 }
 0x2c8   : > { %v1162_v40 = vadd.f32 %v1161_v63, %v1160_v35  ;;  %v2704_v30 = vsub.f32 %v2611_v53, %v1095_v22  ;;  %v2707_v45 = vsub.f32 %v2624_v42, %v1095_v22  ;;  %v2710_v44 = vsub.f32 %v2615_v29, %v1095_v22 }
 0x2c9   : > { %v2714_v1 = vsub.f32 %v2621_v41, %v1095_v22  ;;  %v1150_v41 = vsel %vm722_vm9, %v1132_v11, 0.0  ;;  %v1018_v8 = vmul.f32 %v2526_v4, %v861_v0 }
 0x2ca   : > { %v1164_v28 = vadd.f32 %v1163_v13, %v1162_v40  ;;  %v1121_v53 = vmul.f32 %v2704_v30, %v2704_v30  ;;  %v1122_v42 = vmul.f32 %v2707_v45, %v2707_v45  ;;  %v1123_v29 = vmul.f32 %v2710_v44, %v2710_v44 }
 0x2cb   : > { %v1124_v20 = vmul.f32 %v2714_v1, %v2714_v1  ;;  %v1151_v47 = vadd.f32 %v1150_v41, %v1149_v9  ;;  %v1061_v11 = vsel %vm722_vm9, %v1018_v8, 0.0  ;;  %v1063_v9 = vsel %vm722_vm9, %v1019_v32, 0.0 }
 0x2cc   : > { %v1165_v33 = vrot.slane %v1164_v28, 4  ;;  %v1137_v43 = vmul.f32 %v1121_v53, %v2518_v49  ;;  %v1138_v23 = vmul.f32 %v1122_v42, %v2520_v52  ;;  %v1139_v19 = vmul.f32 %v1123_v29, %v2528_v61 }
 0x2cd   : > { %v1140_v22 = vmul.f32 %v1124_v20, %v2534_v36  ;;  %v1062_v12 = vadd.f32 %v1061_v11, %v1060_v24  ;;  %v1152_v53 = vrot.slane %v1151_v47, 4 }
 0x2ce   : > { %v1166_v35 = vadd.f32 %v1165_v33, %v1164_v28  ;;  %v1171_v62 = vsel %vm722_vm9, %v1137_v43, 0.0  ;;  %v1172_v7 = vsel %vm722_vm9, %v1138_v23, 0.0  ;;  %v1174_v13 = vsel %vm722_vm9, %v1139_v19, 0.0 }
 0x2cf   : > { %v1173_v63 = vadd.f32 %v1172_v7, %v1171_v62  ;;  %v1064_v42 = vadd.f32 %v1063_v9, %v1062_v12  ;;  %v1176_v41 = vsel %vm722_vm9, %v1140_v22, 0.0  ;;  %v1065_v28 = vsel %vm722_vm9, %v1020_v26, 0.0 }
 0x2d0   : > { %v1167_v40 = vrot.slane %v1166_v35, 2  ;;  %v1153_v23 = vadd.f32 %v1152_v53, %v1151_v47 }
 0x2d1   : > { %v1175_v17 = vadd.f32 %v1174_v13, %v1173_v63  ;;  %v1066_v8 = vadd.f32 %v1065_v28, %v1064_v42 }
 0x2d2   : > { %v1168_v29 = vadd.f32 %v1167_v40, %v1166_v35  ;;  %v1154_v63 = vrot.slane %v1153_v23, 2 }
 0x2d3   : > { %v1177_v20 = vadd.f32 %v1176_v41, %v1175_v17  ;;  %v1067_v62 = vrot.slane %v1066_v8, 4 }
 0x2d4   : > { %v1169_v33 = vrot.slane %v1168_v29, 1  ;;  %v1155_v26 = vadd.f32 %v1154_v63, %v1153_v23 }
 0x2d5   : > { %v1178_v43 = vrot.slane %v1177_v20, 4  ;;  %v1068_v7 = vadd.f32 %v1067_v62, %v1066_v8  ;;  %v1227_v8 = vsub.s32 1, %v2543_v56 }
 0x2d6   : > { %v1170_v24 = vadd.f32 %v1169_v33, %v1168_v29  ;;  %v1156_v53 = vrot.slane %v1155_v26, 1 }
 0x2d7   : > { %v1179_v11 = vadd.f32 %v1178_v43, %v1177_v20  ;;  %v1069_v13 = vrot.slane %v1068_v7, 2 }
 0x2d8   : > { %v1198_v19 = vmul.f32 %v1170_v24, %v2538_v39  ;;  %v1157_v33 = vadd.f32 %v1156_v53, %v1155_v26 }
 0x2d9   : > { %v1180_v32 = vrot.slane %v1179_v11, 2  ;;  %v1070_v40 = vadd.f32 %v1069_v13, %v1068_v7  ;;  %v2774_v7 = vrot.slane %v2551_v3, %v1227_v8 }
 0x2da   : > { %v1202_v12 = vadd.f32 1e-05, %v1198_v19  ;;  %v1197_v19 = vmul.f32 %v1157_v33, %v2635_v55 }
 0x2db   : > { %v1181_v35 = vadd.f32 %v1180_v32, %v1179_v11  ;;  %v1071_v9 = vrot.slane %v1070_v40, 1 }
 0x2dc   : > { %2014 = vrsqrt.f32 %v1202_v12  ;;  %v1201_v53 = vadd.f32 1e-05, %v1197_v19 }
 0x2dd   : > { %v1182_v22 = vrot.slane %v1181_v35, 1  ;;  %v1072_v42 = vadd.f32 %v1071_v9, %v1070_v40 }
 0x2df   : > { %v1183_v17 = vadd.f32 %v1182_v22, %v1181_v35  ;;  %v1096_v29 = vmul.f32 %v2545_v51, %v1072_v42 }
 0x2e1   : > { %v1199_v47 = vmul.f32 %v1183_v17, %v2540_v54  ;;  %v2750_v39 = vsub.f32 %v2689_v38, %v1096_v29  ;;  %v2752_v28 = vsub.f32 %v861_v0, %v1096_v29  ;;  %v2755_v20 = vsub.f32 %v2698_v50, %v1096_v29 }
 0x2e2   : > { %v2759_v43 = vsub.f32 %v2717_v16, %v1096_v29  ;;  %v1247_v16 = vsub.s32 2, %v2543_v56 }
 0x2e3   : > { %v1203_v41 = vadd.f32 1e-05, %v1199_v47  ;;  %v1125_v54 = vmul.f32 %v2750_v39, %v2750_v39  ;;  %v1126_v23 = vmul.f32 %v2752_v28, %v2752_v28  ;;  %v1127_v38 = vmul.f32 %v2755_v20, %v2755_v20 }
 0x2e4   : > { %v1128_v50 = vmul.f32 %v2759_v43, %v2759_v43  ;;  %v2786_v17 = vrot.slane %v2551_v3, %v1247_v16 }
 0x2e5   : > { %2016 = vrsqrt.f32 %v1203_v41  ;;  %v1141_v0 = vmul.f32 %v1125_v54, %v2524_v60  ;;  %v1142_v62 = vmul.f32 %v1126_v23, %v2526_v4  ;;  %v1143_v24 = vmul.f32 %v1127_v38, %v2532_v34 }
 0x2e6   : > { %v1144_v63 = vmul.f32 %v1128_v50, %v2536_v27  ;;  %2018 = vrsqrt.f32 %v1201_v53 }
 0x2e7   : > { %v1184_v13 = vsel %vm722_vm9, %v1141_v0, 0.0  ;;  %v1185_v12 = vsel %vm722_vm9, %v1142_v62, 0.0  ;;  %v1187_v9 = vsel %vm722_vm9, %v1143_v24, 0.0 }
 0x2e8   : > { %v1186_v35 = vadd.f32 %v1185_v12, %v1184_v13  ;;  %v1189_v29 = vsel %vm722_vm9, %v1144_v63, 0.0 }
 0x2e9   : > { %v2015_v11 = vpop.eup %2014 }
 0x2ea   : > { %v1214_v32 = vmul.f32 %v2015_v11, %v2666_v5  ;;  %v1213_v40 = vmul.f32 %v2015_v11, %v2663_v57  ;;  %v1215_v22 = vmul.f32 %v2015_v11, %v2669_v21  ;;  %v1216_v55 = vmul.f32 %v2015_v11, %v2672_v10 }
 0x2eb   : > { %v1188_v5 = vadd.f32 %v1187_v9, %v1186_v35 }
 0x2ec   : > { %v1234_v26 = vmul.f32 %v2774_v7, %v1214_v32  ;;  %v1233_v42 = vmul.f32 %v2774_v7, %v1213_v40  ;;  %v1235_v47 = vmul.f32 %v2774_v7, %v1215_v22  ;;  %v1236_v21 = vmul.f32 %v2774_v7, %v1216_v55 }
 0x2ed   : > { %v1190_v41 = vadd.f32 %v1189_v29, %v1188_v5 }
 0x2ee   : > { %v2793_v57 = vadd.f32 %v2786_v17, %v1234_v26  ;;  %v2797_v8 = vadd.f32 %v2786_v17, %v1233_v42  ;;  %v2801_v10 = vadd.f32 %v2786_v17, %v1235_v47  ;;  %v2805_v50 = vadd.f32 %v2786_v17, %v1236_v21 }
 0x2ef   : > { %v1191_v33 = vrot.slane %v1190_v41, 4 }
 0x2f0   : > { %v1366_v3 = vmin.f32 %v2793_v57, 20.0  ;;  %v1365_v54 = vmin.f32 %v2797_v8, 20.0  ;;  %v1367_v16 = vmin.f32 %v2801_v10, 20.0  ;;  %v1368_v63 = vmin.f32 %v2805_v50, 20.0 }
 0x2f1   : > { %v1192_v62 = vadd.f32 %v1191_v33, %v1190_v41  ;;  %vm1350_vm10 = vcmp.gt.f32.partialorder %v2793_v57, 20.0  ;;  %vm1349_vm11 = vcmp.gt.f32.partialorder %v2797_v8, 20.0  ;;  %vm1351_vm12 = vcmp.gt.f32.partialorder %v2801_v10, 20.0 }
 0x2f2   : > { %v2017_v23 = vpop.eup %2016  ;;  %v1387_v38 = vmul.f32 1.442695, %v1366_v3  ;;  %v1385_v24 = vmul.f32 1.442695, %v1365_v54  ;;  %v1389_v32 = vmul.f32 1.442695, %v1367_v16 }
 0x2f3   : > { %v1218_v0 = vmul.f32 %v2017_v23, %v2707_v45  ;;  %v1193_v19 = vrot.slane %v1192_v62, 2  ;;  %v1219_v13 = vmul.f32 %v2017_v23, %v2710_v44  ;;  %v1217_v45 = vmul.f32 %v2017_v23, %v2704_v30  ;;  %v2019_v41 = vpop.eup %2018 }
 0x2f4   : > { %2020 = vpow2.f32 %v1387_v38  ;;  %v1391_v40 = vmul.f32 1.442695, %v1368_v63  ;;  %v1220_v54 = vmul.f32 %v2017_v23, %v2714_v1  ;;  %vm1352_vm13 = vcmp.gt.f32.partialorder %v2805_v50, 20.0 }
 0x2f5   : > { %v1238_v11 = vmul.f32 %v2774_v7, %v1218_v0  ;;  %2022 = vpow2.f32 %v1385_v24  ;;  %v1194_v12 = vadd.f32 %v1193_v19, %v1192_v62  ;;  %v1239_v22 = vmul.f32 %v2774_v7, %v1219_v13 }
 0x2f6   : > { %2024 = vpow2.f32 %v1389_v32  ;;  %v1237_v5 = vmul.f32 %v2774_v7, %v1217_v45  ;;  %v1209_v62 = vmul.f32 %v2019_v41, %v2640_v2  ;;  %v1211_v19 = vmul.f32 %v2019_v41, %v2650_v37 }
 0x2f7   : > { %v2813_v35 = vadd.f32 %v2786_v17, %v1238_v11  ;;  %v1195_v26 = vrot.slane %v1194_v12, 1  ;;  %2026 = vpow2.f32 %v1391_v40  ;;  %v2819_v55 = vadd.f32 %v2786_v17, %v1239_v22 }
 0x2f8   : > { %v2824_v53 = vadd.f32 %v2786_v17, %v1237_v5  ;;  %v1229_v63 = vmul.f32 %v2774_v7, %v1209_v62  ;;  %v1210_v2 = vmul.f32 %v2019_v41, %v2643_v59  ;;  %v1231_v40 = vmul.f32 %v2774_v7, %v1211_v19 }
 0x2f9   : > { %v1370_v9 = vmin.f32 %v2813_v35, 20.0  ;;  %v1196_v44 = vadd.f32 %v1195_v26, %v1194_v12  ;;  %v1371_v47 = vmin.f32 %v2819_v55, 20.0  ;;  %v1212_v37 = vmul.f32 %v2019_v41, %v2655_v46 }
 0x2fa   : > { %v1369_v21 = vmin.f32 %v2824_v53, 20.0  ;;  %v2838_v45 = vadd.f32 %v2786_v17, %v1229_v63  ;;  %v1230_v5 = vmul.f32 %v2774_v7, %v1210_v2  ;;  %vm1354_vm14 = vcmp.gt.f32.partialorder %v2813_v35, 20.0 }
 0x2fb   : > { %v1395_v42 = vmul.f32 1.442695, %v1370_v9  ;;  %v1200_v30 = vmul.f32 %v1196_v44, %v2545_v51  ;;  %v1397_v29 = vmul.f32 1.442695, %v1371_v47  ;;  %v1240_v51 = vmul.f32 %v2774_v7, %v1220_v54 }
 0x2fc   : > { %v1393_v33 = vmul.f32 1.442695, %v1369_v21  ;;  %v1361_v59 = vmin.f32 %v2838_v45, 20.0  ;;  %v2846_v47 = vadd.f32 %v2786_v17, %v1231_v40  ;;  %v1232_v54 = vmul.f32 %v2774_v7, %v1212_v37 }
 0x2fd   : > { %2028 = vpow2.f32 %v1395_v42  ;;  %v1204_v3 = vadd.f32 1e-05, %v1200_v30  ;;  %v2834_v23 = vadd.f32 %v2786_v17, %v1240_v51  ;;  %vm1355_vm15 = vcmp.gt.f32.partialorder %v2819_v55, 20.0 }
 0x2fe   : > { %2030 = vpow2.f32 %v1397_v29  ;;  %v1363_v63 = vmin.f32 %v2846_v47, 20.0  ;;  %v2880_v37 = vadd.f32 %v2786_v17, %v1232_v54  ;;  %vm1353_vm1 = vcmp.gt.f32.partialorder %v2824_v53, 20.0 }
 0x2ff   : > { %2032 = vrsqrt.f32 %v1204_v3  ;;  %v1372_v26 = vmin.f32 %v2834_v23, 20.0  ;;  %vm1356_vm4 = vcmp.gt.f32.partialorder %v2834_v23, 20.0  ;;  %vm1345_vm6 = vcmp.gt.f32.partialorder %v2838_v45, 20.0 }
 0x300   : > { %2034 = vpow2.f32 %v1393_v33  ;;  %vm1347_vm8 = vcmp.gt.f32.partialorder %v2846_v47, 20.0 }
 0x301   : > { %v2021_v38 = vpop.eup %2020  ;;  %v1399_v33 = vmul.f32 1.442695, %v1372_v26 }
 0x302   : > { %v2023_v0 = vpop.eup %2022  ;;  %v1414_v24 = vadd.f32 1.0, %v2021_v38 }
 0x303   : > { %v1413_v16 = vadd.f32 1.0, %v2023_v0  ;;  %v2025_v11 = vpop.eup %2024 }
 0x304   : > { %2036 = vlog2.f32 %v1414_v24  ;;  %v1415_v32 = vadd.f32 1.0, %v2025_v11  ;;  %v2027_v13 = vpop.eup %2026 }
 0x305   : > { %2038 = vlog2.f32 %v1413_v16  ;;  %v1416_v1 = vadd.f32 1.0, %v2027_v13 }
 0x306   : > { %2040 = vlog2.f32 %v1415_v32 }
 0x307   : > { %2042 = vlog2.f32 %v1416_v1 }
 0x30a   : > { %v2029_v12 = vpop.eup %2028 }
 0x30b   : > { %v1418_v22 = vadd.f32 1.0, %v2029_v12  ;;  %v2031_v9 = vpop.eup %2030 }
 0x30c   : > { %v2033_v44 = vpop.eup %2032  ;;  %v1419_v42 = vadd.f32 1.0, %v2031_v9 }
 0x30d   : > { %2044 = vlog2.f32 %v1418_v22  ;;  %v2035_v30 = vpop.eup %2034  ;;  %v1222_v29 = vmul.f32 %v2033_v44, %v2752_v28  ;;  %v1221_v21 = vmul.f32 %v2033_v44, %v2750_v39  ;;  %v1223_v46 = vmul.f32 %v2033_v44, %v2755_v20 }
 0x30e   : > { %v1224_v41 = vmul.f32 %v2033_v44, %v2759_v43  ;;  %2046 = vlog2.f32 %v1419_v42  ;;  %v1417_v3 = vadd.f32 1.0, %v2035_v30  ;;  %v2857_v28 = vadd.f32 %v2786_v17, %v1230_v5 }
 0x30f   : > { %v1242_v0 = vmul.f32 %v2774_v7, %v1222_v29  ;;  %v1241_v62 = vmul.f32 %v2774_v7, %v1221_v21  ;;  %v1243_v24 = vmul.f32 %v2774_v7, %v1223_v46  ;;  %v1377_v43 = vmul.f32 1.442695, %v1361_v59 }
 0x310   : > { %2048 = vlog2.f32 %v1417_v3  ;;  %v1244_v19 = vmul.f32 %v2774_v7, %v1224_v41  ;;  %v1362_v22 = vmin.f32 %v2857_v28, 20.0  ;;  %v1381_v42 = vmul.f32 1.442695, %v1363_v63 }
 0x311   : > { %v2037_v38 = vpop.eup %2036  ;;  %v2861_v51 = vadd.f32 %v2786_v17, %v1242_v0  ;;  %v2864_v11 = vadd.f32 %v2786_v17, %v1241_v62  ;;  %2050 = vpow2.f32 %v1399_v33  ;;  %v2874_v12 = vadd.f32 %v2786_v17, %v1243_v24 }
 0x312   : > { %v2039_v39 = vpop.eup %2038  ;;  %v1436_v20 = vmul.f32 0.6931472, %v2037_v38  ;;  %v2883_v5 = vadd.f32 %v2786_v17, %v1244_v19  ;;  %2052 = vpow2.f32 %v1377_v43  ;;  %v1379_v46 = vmul.f32 1.442695, %v1362_v22 }
 0x313   : > { %v1434_v16 = vmul.f32 0.6931472, %v2039_v39  ;;  %v2041_v13 = vpop.eup %2040  ;;  %v1374_v2 = vmin.f32 %v2861_v51, 20.0  ;;  %v1373_v40 = vmin.f32 %v2864_v11, 20.0  ;;  %v1375_v29 = vmin.f32 %v2874_v12, 20.0 }
 0x314   : > { %v1462_v32 = vsel %vm1350_vm10, %v2793_v57, %v1436_v20  ;;  %v1438_v7 = vmul.f32 0.6931472, %v2041_v13  ;;  %v2043_v26 = vpop.eup %2042  ;;  %v1364_v41 = vmin.f32 %v2880_v37, 20.0  ;;  %v1376_v33 = vmin.f32 %v2883_v5, 20.0 }
 0x315   : > { %1499 = vrot.lane.b32.xlu0 %v1462_v32, %s2192_s13  ;;  %v1461_v1 = vsel %vm1349_vm11, %v2797_v8, %v1434_v16  ;;  %v1403_v9 = vmul.f32 1.442695, %v1374_v2  ;;  %v1401_v44 = vmul.f32 1.442695, %v1373_v40  ;;  %v1440_v30 = vmul.f32 0.6931472, %v2043_v26 }
 0x316   : > { %1497 = vrot.lane.b32.xlu1 %v1461_v1, %s2192_s13  ;;  %v1463_v59 = vsel %vm1351_vm12, %v2801_v10, %v1438_v7  ;;  %v1405_v3 = vmul.f32 1.442695, %v1375_v29  ;;  %v1407_v62 = vmul.f32 1.442695, %v1376_v33  ;;  %v1383_v39 = vmul.f32 1.442695, %v1364_v41 }
 0x317   : > { %2054 = vpow2.f32 %v1403_v9  ;;  %v1464_v38 = vsel %vm1352_vm13, %v2805_v50, %v1440_v30  ;;  %vm1358_vm2 = vcmp.gt.f32.partialorder %v2861_v51, 20.0  ;;  %vm1357_vm3 = vcmp.gt.f32.partialorder %v2864_v11, 20.0 }
 0x318   : > { %2056 = vpow2.f32 %v1401_v44  ;;  %vm1359_vm5 = vcmp.gt.f32.partialorder %v2874_v12, 20.0  ;;  %vm1360_vm7 = vcmp.gt.f32.partialorder %v2883_v5, 20.0  ;;  %vm1346_vm10 = vcmp.gt.f32.partialorder %v2857_v28, 20.0 }
 0x319   : > { %2058 = vpow2.f32 %v1381_v42  ;;  %vm1348_vm11 = vcmp.gt.f32.partialorder %v2880_v37, 20.0 }
 0x31a   : > { %v2045_v21 = vpop.eup %2044  ;;  %1501 = vrot.lane.b32.xlu1 %v1463_v59, %s2192_s13  ;;  %2060 = vpow2.f32 %v1405_v3 }
 0x31b   : > { %v1444_v17 = vmul.f32 0.6931472, %v2045_v21  ;;  %v2047_v54 = vpop.eup %2046  ;;  %2062 = vpow2.f32 %v1379_v46 }
 0x31c   : > { %v1446_v24 = vmul.f32 0.6931472, %v2047_v54  ;;  %2064 = vpow2.f32 %v1407_v62 }
 0x31d   : > { %v1466_v0 = vsel %vm1354_vm14, %v2813_v35, %v1444_v17  ;;  %v2049_v20 = vpop.eup %2048  ;;  %2066 = vpow2.f32 %v1383_v39 }
 0x31e   : > { %1503 = vrot.lane.b32.xlu1 %v1464_v38, %s2192_s13  ;;  %1507 = vrot.lane.b32.xlu0 %v1466_v0, %s2192_s13  ;;  %v1442_v43 = vmul.f32 0.6931472, %v2049_v20  ;;  %v2051_v16 = vpop.eup %2050  ;;  %v1467_v19 = vsel %vm1355_vm15, %v2819_v55, %v1446_v24 }
 0x31f   : > { %v1420_v63 = vadd.f32 1.0, %v2051_v16  ;;  %v2053_v13 = vpop.eup %2052 }
 0x320   : > { %v1465_v32 = vsel %vm1353_vm1, %v2824_v53, %v1442_v43  ;;  %v1409_v22 = vadd.f32 1.0, %v2053_v13  ;;  %vm1732_vm1 = vcmask 785408  }
 0x321   : > { %2068 = vlog2.f32 %v1420_v63 }
 0x322   : > { %1509 = vrot.lane.b32.xlu0 %v1467_v19, %s2192_s13  ;;  %1505 = vrot.lane.b32.xlu1 %v1465_v32, %s2192_s13 }
 0x324   : > { %v2055_v1 = vpop.eup %2054 }
 0x325   : > { %v2057_v2 = vpop.eup %2056  ;;  %v1422_v7 = vadd.f32 1.0, %v2055_v1 }
 0x326   : > { %v1421_v40 = vadd.f32 1.0, %v2057_v2  ;;  %v2059_v26 = vpop.eup %2058 }
 0x327   : > { %2070 = vlog2.f32 %v1422_v7  ;;  %v2061_v9 = vpop.eup %2060  ;;  %v1411_v29 = vadd.f32 1.0, %v2059_v26 }
 0x328   : > { %2072 = vlog2.f32 %v1421_v40  ;;  %v2063_v44 = vpop.eup %2062  ;;  %v1423_v42 = vadd.f32 1.0, %v2061_v9 }
 0x329   : > { %v2065_v59 = vpop.eup %2064  ;;  %2074 = vlog2.f32 %v1409_v22  ;;  %v1410_v21 = vadd.f32 1.0, %v2063_v44 }
 0x32a   : > { %2076 = vlog2.f32 %v1423_v42  ;;  %v1424_v30 = vadd.f32 1.0, %v2065_v59  ;;  %v2067_v46 = vpop.eup %2066 }
 0x32b   : > { %v1412_v41 = vadd.f32 1.0, %v2067_v46 }
 0x32c   : > { %2078 = vlog2.f32 %v1424_v30 }
 0x32d   : > { %2080 = vlog2.f32 %v1411_v29  ;;  %v1270_v29 = vsub.f32 0.0, %v2793_v57 }
 0x32e   : > { %2082 = vlog2.f32 %v1410_v21  ;;  %v2069_v17 = vpop.eup %2068  ;;  %v1269_v21 = vsub.f32 0.0, %v2797_v8 }
 0x32f   : > { %2084 = vlog2.f32 %v1412_v41  ;;  %v1448_v24 = vmul.f32 0.6931472, %v2069_v17  ;;  %v1291_v46 = vmul.f32 1.442695, %v1270_v29  ;;  %v1271_v17 = vsub.f32 0.0, %v2801_v10 }
 0x330   : > { %v1289_v41 = vmul.f32 1.442695, %v1269_v21 }
 0x331   : > { %v1468_v19 = vsel %vm1356_vm4, %v2834_v23, %v1448_v24  ;;  %2086 = vpow2.f32 %v1291_v46 }
 0x332   : > { %2088 = vpow2.f32 %v1289_v41 }
 0x334   : > { %v2071_v3 = vpop.eup %2070 }
 0x335   : > { %v2073_v33 = vpop.eup %2072  ;;  %v1452_v54 = vmul.f32 0.6931472, %v2071_v3  ;;  %v1293_v3 = vmul.f32 1.442695, %v1271_v17 }
 0x336   : > { %v1450_v38 = vmul.f32 0.6931472, %v2073_v33  ;;  %v2075_v0 = vpop.eup %2074  ;;  %v1272_v33 = vsub.f32 0.0, %v2805_v50 }
 0x337   : > { %v1470_v62 = vsel %vm1358_vm2, %v2861_v51, %v1452_v54  ;;  %v2077_v39 = vpop.eup %2076  ;;  %v1426_v32 = vmul.f32 0.6931472, %v2075_v0  ;;  %v1274_v54 = vsub.f32 0.0, %v2813_v35  ;;  %v1275_v0 = vsub.f32 0.0, %v2819_v55 }
 0x338   : > { %1515 = vrot.lane.b32.xlu1 %v1470_v62, %s2192_s13  ;;  %v1469_v20 = vsel %vm1357_vm3, %v2864_v11, %v1450_v38  ;;  %v1454_v43 = vmul.f32 0.6931472, %v2077_v39  ;;  %v1295_v38 = vmul.f32 1.442695, %v1272_v33  ;;  %2090 = vpow2.f32 %v1293_v3 }
 0x339   : > { %1513 = vrot.lane.b32.xlu0 %v1469_v20, %s2192_s13  ;;  %v2079_v16 = vpop.eup %2078  ;;  %v1457_v7 = vsel %vm1345_vm6, %v2838_v45, %v1426_v32  ;;  %v1273_v62 = vsub.f32 0.0, %v2824_v53  ;;  %v1299_v57 = vmul.f32 1.442695, %v1274_v54  ;;  %v1301_v24 = vmul.f32 1.442695, %v1275_v0 }
 0x33a   : > { %v2081_v63 = vpop.eup %2080  ;;  %v1471_v13 = vsel %vm1359_vm5, %v2874_v12, %v1454_v43  ;;  %v1456_v1 = vmul.f32 0.6931472, %v2079_v16  ;;  %2092 = vpow2.f32 %v1295_v38  ;;  %v1267_v38 = vsub.f32 0.0, %v2846_v47 }
 0x33b   : > { %v2083_v2 = vpop.eup %2082  ;;  %v1430_v40 = vmul.f32 0.6931472, %v2081_v63  ;;  %v1297_v8 = vmul.f32 1.442695, %v1273_v62  ;;  %2094 = vpow2.f32 %v1299_v57 }
 0x33c   : > { %1511 = vrot.lane.b32.xlu1 %v1468_v19, %s2192_s13  ;;  %v1472_v22 = vsel %vm1360_vm7, %v2883_v5, %v1456_v1  ;;  %v1428_v26 = vmul.f32 0.6931472, %v2083_v2  ;;  %v2085_v9 = vpop.eup %2084  ;;  %2096 = vpow2.f32 %v1301_v24  ;;  %v1277_v2 = vsub.f32 0.0, %v2864_v11 }
 0x33d   : > { %1517 = vrot.lane.b32.xlu0 %v1471_v13, %s2192_s13  ;;  %v1459_v44 = vsel %vm1347_vm8, %v2846_v47, %v1430_v40  ;;  %v1432_v59 = vmul.f32 0.6931472, %v2085_v9  ;;  %2098 = vpow2.f32 %v1297_v8  ;;  %v1278_v13 = vsub.f32 0.0, %v2861_v51 }
 0x33e   : > { %v1458_v42 = vsel %vm1346_vm10, %v2857_v28, %v1428_v26  ;;  %v2087_v39 = vpop.eup %2086  ;;  %v1276_v26 = vsub.f32 0.0, %v2834_v23  ;;  %v1280_v23 = vsub.f32 0.0, %v2883_v5 }
 0x33f   : > { %v1460_v30 = vsel %vm1348_vm11, %v2880_v37, %v1432_v59  ;;  %v2089_v10 = vpop.eup %2088  ;;  %v1318_v20 = vadd.f32 1.0, %v2087_v39  ;;  %v1279_v59 = vsub.f32 0.0, %v2874_v12  ;;  %v1265_v12 = vsub.f32 0.0, %v2838_v45 }
 0x340   : > { %1489 = vrot.lane.b32.xlu1 %v1457_v7, %s2192_s13  ;;  %v1317_v50 = vadd.f32 1.0, %v2089_v10  ;;  %v1303_v46 = vmul.f32 1.442695, %v1276_v26  ;;  %v1311_v62 = vmul.f32 1.442695, %v1280_v23 }
 0x341   : > { %1519 = vrot.lane.b32.xlu0 %v1472_v22, %s2192_s13  ;;  %2100 = vrcp.f32 %v1318_v20  ;;  %v1307_v22 = vmul.f32 1.442695, %v1278_v13  ;;  %v1309_v17 = vmul.f32 1.442695, %v1279_v59  ;;  %v1281_v39 = vmul.f32 1.442695, %v1265_v12 }
 0x342   : > { %2102 = vrcp.f32 %v1317_v50  ;;  %v1285_v20 = vmul.f32 1.442695, %v1267_v38  ;;  %v1268_v50 = vsub.f32 0.0, %v2880_v37 }
 0x344   : > { %1493 = vrot.lane.b32.xlu1 %v1459_v44, %s2192_s13 }
 0x345   : > { %1491 = vrot.lane.b32.xlu0 %v1458_v42, %s2192_s13  ;;  %v2091_v43 = vpop.eup %2090  ;;  %v1305_v42 = vmul.f32 1.442695, %v1277_v2 }
 0x346   : > { %v1319_v35 = vadd.f32 1.0, %v2091_v43 }
 0x347   : > { %v2093_v16 = vpop.eup %2092 }
 0x348   : > { %v2095_v55 = vpop.eup %2094  ;;  %2104 = vrcp.f32 %v1319_v35  ;;  %v1320_v19 = vadd.f32 1.0, %v2093_v16 }
 0x349   : > { %1495 = vrot.lane.b32.xlu0 %v1460_v30, %s2192_s13  ;;  %v2097_v53 = vpop.eup %2096  ;;  %v1322_v63 = vadd.f32 1.0, %v2095_v55 }
 0x34a   : > { %v2099_v32 = vpop.eup %2098  ;;  %2106 = vrcp.f32 %v1320_v19  ;;  %v1323_v1 = vadd.f32 1.0, %v2097_v53 }
 0x34b   : > { %v1321_v7 = vadd.f32 1.0, %v2099_v32  ;;  %2108 = vrcp.f32 %v1322_v63  ;;  %v1287_v32 = vmul.f32 1.442695, %v1268_v50 }
 0x34c   : > { %2110 = vrcp.f32 %v1323_v1 }
 0x34d   : > { %2112 = vrcp.f32 %v1321_v7 }
 0x34e   : > { %v2101_v40 = vpop.eup %2100  ;;  %2114 = vpow2.f32 %v1307_v22 }
 0x34f   : > { %v2103_v44 = vpop.eup %2102  ;;  %2116 = vpow2.f32 %v1305_v42 }
 0x350   : > { %2118 = vpow2.f32 %v1303_v46 }
 0x351   : > { %2120 = vpow2.f32 %v1309_v17 }
 0x352   : > { %2122 = vpow2.f32 %v1311_v62 }
 0x353   : > { %2124 = vpow2.f32 %v1281_v39 }
 0x354   : > { %2126 = vpow2.f32 %v1285_v20 }
 0x355   : > { %v2105_v41 = vpop.eup %2104 }
 0x387   : > { %v1500_v9 = vpop.permute.xlu0 %1499 }
 0x388   : > { %v1542_v30 = vmul.f32 %v2101_v40, %v1500_v9  ;;  %v1498_v29 = vpop.permute.xlu1 %1497 }
 0x389   : > { %v1541_v51 = vmul.f32 %v2103_v44, %v1498_v29 }
 0x38a   : > { %v1558_v21 = vmul.f32 %v1542_v30, %v2514_v18  ;;  %v2107_v18 = vpop.eup %2106 }
 0x38b   : > { %v1557_v11 = vmul.f32 %v1541_v51, %v2516_v48  ;;  %v1266_v48 = vsub.f32 0.0, %v2857_v28  ;;  %v2109_v10 = vpop.eup %2108 }
 0x38c   : > { %v1502_v3 = vpop.permute.xlu1 %1501  ;;  %v2111_v47 = vpop.eup %2110 }
 0x38d   : > { %v1570_v33 = vadd.f32 %v1558_v21, %v1557_v11  ;;  %v1543_v54 = vmul.f32 %v2105_v41, %v1502_v3  ;;  %v1283_v43 = vmul.f32 1.442695, %v1266_v48  ;;  %v2113_v16 = vpop.eup %2112 }
 0x38e   : > { %v2115_v13 = vpop.eup %2114 }
 0x38f   : > { %v1559_v0 = vmul.f32 %v1543_v54, %v2522_v58  ;;  %2128 = vpow2.f32 %v1283_v43  ;;  %v2117_v2 = vpop.eup %2116  ;;  %v1326_v26 = vadd.f32 1.0, %v2115_v13 }
 0x390   : > { %v1504_v57 = vpop.permute.xlu1 %1503  ;;  %v1508_v24 = vpop.permute.xlu0 %1507  ;;  %v1325_v42 = vadd.f32 1.0, %v2117_v2  ;;  %2130 = vpow2.f32 %v1287_v32 }
 0x391   : > { %v1574_v8 = vadd.f32 %v1570_v33, %v1559_v0  ;;  %v1544_v5 = vmul.f32 %v2107_v18, %v1504_v57  ;;  %v1546_v58 = vmul.f32 %v2109_v10, %v1508_v24  ;;  %v2119_v9 = vpop.eup %2118  ;;  %2132 = vrcp.f32 %v1326_v26 }
 0x392   : > { %v2121_v30 = vpop.eup %2120  ;;  %v1324_v51 = vadd.f32 1.0, %v2119_v9  ;;  %2134 = vrcp.f32 %v1325_v42 }
 0x393   : > { %v1560_v45 = vmul.f32 %v1544_v5, %v2530_v31  ;;  %v1562_v37 = vmul.f32 %v1546_v58, %v2520_v52  ;;  %v1327_v52 = vadd.f32 1.0, %v2121_v30 }
 0x394   : > { %v1510_v35 = vpop.permute.xlu0 %1509  ;;  %v1506_v28 = vpop.permute.xlu1 %1505  ;;  %2136 = vrcp.f32 %v1324_v51 }
 0x395   : > { %v1578_v55 = vadd.f32 %v1574_v8, %v1560_v45  ;;  %v1547_v19 = vmul.f32 %v2111_v47, %v1510_v35  ;;  %v1545_v53 = vmul.f32 %v2113_v16, %v1506_v28  ;;  %2138 = vrcp.f32 %v1327_v52 }
 0x397   : > { %v1588_v63 = vsel %vm306_vm0, %v1578_v55, 0.0  ;;  %v1561_v31 = vmul.f32 %v1545_v53, %v2518_v49  ;;  %v1563_v40 = vmul.f32 %v1547_v19, %v2528_v61  ;;  %v2123_v49 = vpop.eup %2122 }
 0x398   : > { %v1589_v1 = vrot.slane %v1588_v63, 4  ;;  %v2125_v11 = vpop.eup %2124  ;;  %v1328_v17 = vadd.f32 1.0, %v2123_v49 }
 0x399   : > { %v1571_v22 = vadd.f32 %v1562_v37, %v1561_v31  ;;  %v2127_v41 = vpop.eup %2126  ;;  %v1313_v33 = vadd.f32 1.0, %v2125_v11 }
 0x39a   : > { %v1590_v7 = vadd.f32 %v1589_v1, %v1588_v63  ;;  %v1315_v54 = vadd.f32 1.0, %v2127_v41  ;;  %2140 = vrcp.f32 %v1328_v17 }
 0x39b   : > { %v1575_v59 = vadd.f32 %v1571_v22, %v1563_v40  ;;  %2142 = vrcp.f32 %v1313_v33 }
 0x39c   : > { %v1591_v44 = vrot.slane %v1590_v7, 2  ;;  %v2129_v23 = vpop.eup %2128  ;;  %2144 = vrcp.f32 %v1315_v54 }
 0x39d   : > { %v1314_v38 = vadd.f32 1.0, %v2129_v23  ;;  %v2131_v0 = vpop.eup %2130 }
 0x39e   : > { %v1592_v29 = vadd.f32 %v1591_v44, %v1590_v7  ;;  %v2133_v48 = vpop.eup %2132  ;;  %v1316_v24 = vadd.f32 1.0, %v2131_v0 }
 0x39f   : > { %2146 = vrcp.f32 %v1314_v38  ;;  %v2135_v8 = vpop.eup %2134 }
 0x3a0   : > { %v1593_v21 = vrot.slane %v1592_v29, 1  ;;  %2148 = vrcp.f32 %v1316_v24 }
 0x3a1   : > { %v2137_v47 = vpop.eup %2136 }
 0x3a2   : > { %v1594_v46 = vadd.f32 %v1593_v21, %v1592_v29  ;;  %v2139_v35 = vpop.eup %2138 }
 0x3a4   : > { %v1611_v61 = vmul.f32 0.125, %v1594_v46 }
 0x3a6   : > { %v2954_v3 = vsub.f32 %v1578_v55, %v1611_v61 }
 0x3a7   : > { %v2141_v37 = vpop.eup %2140 }
 0x3a8   : > { %v1619_v12 = vmul.f32 %v2954_v3, %v2954_v3  ;;  %v2143_v40 = vpop.eup %2142 }
 0x3a9   : > { %v2145_v9 = vpop.eup %2144 }
 0x3aa   : > { %v1629_v18 = vsel %vm306_vm0, %v1619_v12, 0.0  ;;  %v1516_v57 = vpop.permute.xlu1 %1515 }
 0x3ab   : > { %v1630_v62 = vrot.slane %v1629_v18, 4  ;;  %v1550_v39 = vmul.f32 %v2133_v48, %v1516_v57  ;;  %v1514_v10 = vpop.permute.xlu0 %1513 }
 0x3ac   : > { %v1549_v20 = vmul.f32 %v2135_v8, %v1514_v10 }
 0x3ad   : > { %v1631_v5 = vadd.f32 %v1630_v62, %v1629_v18  ;;  %v1566_v45 = vmul.f32 %v1550_v39, %v2526_v4 }
 0x3ae   : > { %v1565_v43 = vmul.f32 %v1549_v20, %v2524_v60  ;;  %v1512_v58 = vpop.permute.xlu1 %1511 }
 0x3af   : > { %v1632_v50 = vrot.slane %v1631_v5, 2  ;;  %v1548_v55 = vmul.f32 %v2137_v47, %v1512_v58  ;;  %v1518_v28 = vpop.permute.xlu0 %1517  ;;  %v2174_v47 = vld [vmem:[%s3012_s4] sm:$0x1f] }
 0x3b0   : > { %v1572_v19 = vadd.f32 %v1566_v45, %v1565_v43  ;;  %v1551_v53 = vmul.f32 %v2139_v35, %v1518_v28 }
 0x3b1   : > { %v1633_v16 = vadd.f32 %v1632_v50, %v1631_v5  ;;  %v1564_v63 = vmul.f32 %v1548_v55, %v2534_v36  ;;  %v2147_v36 = vpop.eup %2146  ;;  %v1668_v5 = vsub.s32 3, %v2543_v56 }
 0x3b2   : > { %v1567_v13 = vmul.f32 %v1551_v53, %v2532_v34  ;;  %v1490_v1 = vpop.permute.xlu1 %1489  ;;  %v2149_v17 = vpop.eup %2148 }
 0x3b3   : > { %v1634_v32 = vrot.slane %v1633_v16, 1  ;;  %v1579_v4 = vadd.f32 %v1575_v59, %v1564_v63  ;;  %v1520_v2 = vpop.permute.xlu0 %1519  ;;  %v1537_v42 = vmul.f32 %v2143_v40, %v1490_v1 }
 0x3b4   : > { %v1576_v7 = vadd.f32 %v1572_v19, %v1567_v13  ;;  %v1552_v60 = vmul.f32 %v2141_v37, %v1520_v2 }
 0x3b5   : > { %v1635_v31 = vadd.f32 %v1634_v32, %v1633_v16  ;;  %v1595_v26 = vsel %vm306_vm0, %v1579_v4, 0.0  ;;  %v1553_v11 = vmul.f32 %v1537_v42, %v2553_v6 }
 0x3b6   : > { %v1596_v44 = vrot.slane %v1595_v26, 4  ;;  %v1568_v30 = vmul.f32 %v1552_v60, %v2536_v27  ;;  %v1494_v29 = vpop.permute.xlu1 %1493  ;;  %v2175_v60 = vld [vmem:[%s2246_s29 + $0x8] sm:$0xff] }
 0x3b7   : > { %v1651_v22 = vmul.f32 0.125, %v1635_v31  ;;  %v1492_v34 = vpop.permute.xlu0 %1491  ;;  %v1539_v49 = vmul.f32 %v2145_v9, %v1494_v29 }
 0x3b8   : > { %v1597_v21 = vadd.f32 %v1596_v44, %v1595_v26  ;;  %v1580_v52 = vadd.f32 %v1576_v7, %v1568_v30  ;;  %v1538_v59 = vmul.f32 %v2147_v36, %v1492_v34 }
 0x3b9   : > { %v1655_v51 = vadd.f32 1e-05, %v1651_v22  ;;  %v1555_v54 = vmul.f32 %v1539_v49, %v2566_v15  ;;  %v1676_v15 = vsub.s32 4, %v2543_v56 }
 0x3ba   : > { %v1598_v46 = vrot.slane %v1597_v21, 2  ;;  %v1602_v41 = vsel %vm306_vm0, %v1580_v52, 0.0  ;;  %v1554_v61 = vmul.f32 %v1538_v59, %v2558_v14 }
 0x3bb   : > { %2150 = vrsqrt.f32 %v1655_v51  ;;  %v1603_v23 = vrot.slane %v1602_v41, 4  ;;  %v1496_v33 = vpop.permute.xlu0 %1495  ;;  %v2979_v19 = vrot.slane %v2174_v47, %v1676_v15 }
 0x3bc   : > { %v1599_v27 = vadd.f32 %v1598_v46, %v1597_v21  ;;  %v1569_v12 = vadd.f32 %v1554_v61, %v1553_v11  ;;  %v1540_v38 = vmul.f32 %v2149_v17, %v1496_v33 }
 0x3bd   : > { %v1604_v0 = vadd.f32 %v1603_v23, %v1602_v41 }
 0x3be   : > { %v1600_v18 = vrot.slane %v1599_v27, 1  ;;  %v1573_v62 = vadd.f32 %v1569_v12, %v1555_v54  ;;  %v1556_v48 = vmul.f32 %v1540_v38, %v2576_v25  ;;  %v2976_v25 = vrot.slane %v2174_v47, %v1668_v5 }
 0x3bf   : > { %v1605_v57 = vrot.slane %v1604_v0, 2 }
 0x3c0   : > { %v1601_v24 = vadd.f32 %v1600_v18, %v1599_v27  ;;  %v1577_v6 = vadd.f32 %v1573_v62, %v1556_v48 }
 0x3c1   : > { %v1606_v8 = vadd.f32 %v1605_v57, %v1604_v0 }
 0x3c2   : > { %v1612_v14 = vmul.f32 0.125, %v1601_v24  ;;  %v1581_v39 = vsel %vm306_vm0, %v1577_v6, 0.0 }
 0x3c3   : > { %v1607_v10 = vrot.slane %v1606_v8, 1  ;;  %v1582_v20 = vrot.slane %v1581_v39, 4 }
 0x3c4   : > { %v1616_v50 = vsub.f32 %v1579_v4, %v1612_v14 }
 0x3c5   : > { %v1608_v45 = vadd.f32 %v1607_v10, %v1606_v8  ;;  %v1583_v43 = vadd.f32 %v1582_v20, %v1581_v39  ;;  %v2176_v39 = vld [vmem:[%s2246_s29 + $0x10] sm:$0xff] }
 0x3c6   : > { %v1620_v35 = vmul.f32 %v1616_v50, %v1616_v50 }
 0x3c7   : > { %v1613_v55 = vmul.f32 0.125, %v1608_v45  ;;  %v1584_v28 = vrot.slane %v1583_v43, 2 }
 0x3c8   : > { %v2151_v58 = vpop.eup %2150  ;;  %v1636_v56 = vsel %vm306_vm0, %v1620_v35, 0.0  ;;  %v2177_v35 = vld [vmem:[%s2246_s29 + $0x18] sm:$0xff] }
 0x3c9   : > { %v1663_v16 = vmul.f32 %v2151_v58, %v2954_v3  ;;  %v1637_v53 = vrot.slane %v1636_v56, 4  ;;  %v1617_v32 = vsub.f32 %v1580_v52, %v1613_v55  ;;  %v1585_v63 = vadd.f32 %v1584_v28, %v1583_v43 }
 0x3cb   : > { %v1671_v13 = vmul.f32 %v2976_v25, %v1663_v16  ;;  %v1638_v1 = vadd.f32 %v1637_v53, %v1636_v56  ;;  %v1621_v37 = vmul.f32 %v1617_v32, %v1617_v32  ;;  %v1586_v31 = vrot.slane %v1585_v63, 1 }
 0x3cd   : > { %v1679_v4 = vadd.f32 %v2979_v19, %v1671_v13  ;;  %v1639_v2 = vrot.slane %v1638_v1, 2  ;;  %v1643_v3 = vsel %vm306_vm0, %v1621_v37, 0.0  ;;  %v1587_v7 = vadd.f32 %v1586_v31, %v1585_v63 }
 0x3ce   : > { %v1644_v22 = vrot.slane %v1643_v3, 4 }
 0x3cf   : > { %v1683_v40 = vadd.f32 %v2175_v60, %v1679_v4  ;;  %v1640_v26 = vadd.f32 %v1639_v2, %v1638_v1  ;;  %v1610_v9 = vmul.f32 0.125, %v1587_v7 }
 0x3d0   : > { %v1645_v42 = vadd.f32 %v1644_v22, %v1643_v3 }
 0x3d1   : > { %v1691_v44 = vmin.f32 %v1683_v40, 20.0  ;;  %v1641_v30 = vrot.slane %v1640_v26, 1  ;;  %v1614_v29 = vsub.f32 %v1577_v6, %v1610_v9  ;;  %vm1687_vm12 = vcmp.gt.f32.partialorder %v1683_v40, 20.0 }
 0x3d2   : > { %v1646_v51 = vrot.slane %v1645_v42, 2 }
 0x3d3   : > { %v1696_v36 = vmul.f32 1.442695, %v1691_v44  ;;  %v1642_v34 = vadd.f32 %v1641_v30, %v1640_v26  ;;  %v1618_v21 = vmul.f32 %v1614_v29, %v1614_v29 }
 0x3d4   : > { %v1647_v52 = vadd.f32 %v1646_v51, %v1645_v42 }
 0x3d5   : > { %2152 = vpow2.f32 %v1696_v36  ;;  %v1652_v49 = vmul.f32 0.125, %v1642_v34  ;;  %v1622_v59 = vsel %vm306_vm0, %v1618_v21, 0.0 }
 0x3d6   : > { %v1648_v46 = vrot.slane %v1647_v52, 1  ;;  %v1623_v11 = vrot.slane %v1622_v59, 4 }
 0x3d7   : > { %v1656_v41 = vadd.f32 1e-05, %v1652_v49 }
 0x3d8   : > { %v1649_v61 = vadd.f32 %v1648_v46, %v1647_v52  ;;  %v1624_v17 = vadd.f32 %v1623_v11, %v1622_v59 }
 0x3d9   : > { %2154 = vrsqrt.f32 %v1656_v41 }
 0x3da   : > { %v1653_v23 = vmul.f32 0.125, %v1649_v61  ;;  %v1625_v33 = vrot.slane %v1624_v17, 2 }
 0x3dc   : > { %v1657_v27 = vadd.f32 1e-05, %v1653_v23  ;;  %v1626_v54 = vadd.f32 %v1625_v33, %v1624_v17 }
 0x3de   : > { %2156 = vrsqrt.f32 %v1657_v27  ;;  %v1627_v12 = vrot.slane %v1626_v54, 1 }
 0x3e0   : > { %v1628_v0 = vadd.f32 %v1627_v12, %v1626_v54 }
 0x3e2   : > { %v2153_v38 = vpop.eup %2152  ;;  %v1650_v62 = vmul.f32 0.125, %v1628_v0 }
 0x3e3   : > { %v1703_v18 = vadd.f32 1.0, %v2153_v38 }
 0x3e4   : > { %v1654_v48 = vadd.f32 1e-05, %v1650_v62 }
 0x3e5   : > { %2158 = vlog2.f32 %v1703_v18 }
 0x3e6   : > { %v2155_v57 = vpop.eup %2154  ;;  %2160 = vrsqrt.f32 %v1654_v48 }
 0x3e7   : > { %v1664_v24 = vmul.f32 %v2155_v57, %v1616_v50 }
 0x3e9   : > { %v1672_v6 = vmul.f32 %v2976_v25, %v1664_v24 }
 0x3eb   : > { %v2157_v8 = vpop.eup %2156  ;;  %v1680_v5 = vadd.f32 %v2979_v19, %v1672_v6 }
 0x3ec   : > { %v1665_v14 = vmul.f32 %v2157_v8, %v1617_v32 }
 0x3ed   : > { %v1684_v10 = vadd.f32 %v2176_v39, %v1680_v5 }
 0x3ee   : > { %v1673_v20 = vmul.f32 %v2976_v25, %v1665_v14 }
 0x3ef   : > { %v1692_v15 = vmin.f32 %v1684_v10, 20.0  ;;  %vm1688_vm13 = vcmp.gt.f32.partialorder %v1684_v10, 20.0 }
 0x3f0   : > { %v1681_v47 = vadd.f32 %v2979_v19, %v1673_v20 }
 0x3f1   : > { %v1698_v58 = vmul.f32 1.442695, %v1692_v15 }
 0x3f2   : > { %v2159_v45 = vpop.eup %2158  ;;  %v1685_v16 = vadd.f32 %v2177_v35, %v1681_v47 }
 0x3f3   : > { %v1709_v43 = vmul.f32 0.6931472, %v2159_v45  ;;  %v2161_v50 = vpop.eup %2160  ;;  %2162 = vpow2.f32 %v1698_v58 }
 0x3f4   : > { %v1662_v28 = vmul.f32 %v2161_v50, %v1614_v29  ;;  %v1693_v56 = vmin.f32 %v1685_v16, 20.0  ;;  %vm1689_vm14 = vcmp.gt.f32.partialorder %v1685_v16, 20.0 }
 0x3f5   : > { %v1715_v55 = vsel %vm1687_vm12, %v1683_v40, %v1709_v43 }
 0x3f6   : > { %1719 = vrot.lane.b32.xlu1 %v1715_v55, %s2193_s16  ;;  %v1670_v53 = vmul.f32 %v2976_v25, %v1662_v28  ;;  %v1700_v32 = vmul.f32 1.442695, %v1693_v56 }
 0x3f8   : > { %2164 = vpow2.f32 %v1700_v32  ;;  %v1678_v63 = vadd.f32 %v2979_v19, %v1670_v53  ;;  %v2178_v19 = vld [vmem:[%s2246_s29] sm:$0xff] }
 0x3fa   : > { %v1682_v40 = vadd.f32 %v2178_v19, %v1678_v63 }
 0x3fc   : > { %v1690_v22 = vmin.f32 %v1682_v40, 20.0  ;;  %vm1686_vm15 = vcmp.gt.f32.partialorder %v1682_v40, 20.0 }
 0x3fe   : > { %v1694_v26 = vmul.f32 1.442695, %v1690_v22 }
 0x400   : > { %v2163_v13 = vpop.eup %2162 }
 0x401   : > { %v1704_v1 = vadd.f32 1.0, %v2163_v13 }
 0x403   : > { %2166 = vlog2.f32 %v1704_v1 }
 0x405   : > { %v2165_v37 = vpop.eup %2164 }
 0x406   : > { %v1705_v31 = vadd.f32 1.0, %v2165_v37 }
 0x408   : > { %2168 = vlog2.f32 %v1705_v31 }
 0x409   : > { %2170 = vpow2.f32 %v1694_v26 }
 0x410   : > { %v2167_v4 = vpop.eup %2166 }
 0x411   : > { %v1711_v2 = vmul.f32 0.6931472, %v2167_v4 }
 0x413   : > { %v1716_v3 = vsel %vm1688_vm13, %v1684_v10, %v1711_v2 }
 0x414   : > { %1723 = vrot.lane.b32.xlu0 %v1716_v3, %s2189_s8 }
 0x415   : > { %v2169_v25 = vpop.eup %2168 }
 0x416   : > { %v1713_v7 = vmul.f32 0.6931472, %v2169_v25  ;;  %v2171_v9 = vpop.eup %2170 }
 0x417   : > { %v1702_v44 = vadd.f32 1.0, %v2171_v9 }
 0x418   : > { %v1717_v60 = vsel %vm1689_vm14, %v1685_v16, %v1713_v7 }
 0x419   : > { %1727 = vrot.lane.b32.xlu1 %v1717_v60, %s2192_s13  ;;  %2172 = vlog2.f32 %v1702_v44 }
 0x426   : > { %v2173_v42 = vpop.eup %2172 }
 0x427   : > { %v1707_v30 = vmul.f32 0.6931472, %v2173_v42 }
 0x429   : > { %v1714_v51 = vsel %vm1686_vm15, %v1682_v40, %v1707_v30 }
 0x468   : > { %v1720_v29 = vpop.permute.xlu1 %1719 }
 0x469   : > { %v1730_v34 = vsel %vm306_vm0, %v1714_v51, %v1720_v29 }
 0x486   : > { %v1724_v36 = vpop.permute.xlu0 %1723 }
 0x487   : > { %v1731_v21 = vsel %vm722_vm9, %v1730_v34, %v1724_v36 }
 0x48b   : > { %v1728_v52 = vpop.permute.xlu1 %1727 }
 0x48c   : > { %v1733_v49 = vsel %vm1732_vm1, %v1731_v21, %v1728_v52 }
 0x48d   : > { %1734 = vst [vmem:[%s249_s22] sm:$0xff] %v1733_v49 }
 0x48e PF: > { %s15_s18 = sadd.s32 1, %s2185_s18  }
 0x48f   : > { %p12_p5 = scmp.ge.s32.totalorder %s15_s18, 4  }
 0x491   :  { %14 = sbr.rel (!%p12_p5) target bundleno = 1 (0x1), region = 73 }

</bundles_post_ra>
